<compile_context>
chip_gen: v7x
topology: tpu7x:2x2x1
jax: 0.10.0
libtpu: 0.0.40
codegen_flags: <defaults>
</compile_context>

<pallas_src>
import functools

import numpy as np

import jax
import jax.numpy as jnp
from jax.experimental import pallas as pl
from jax.experimental.pallas import tpu as pltpu

LANES = 128       # every GEMM output width is zero-padded to this (lane-dense stores)
C1 = 8            # conv1 output channels (logical)
C2 = 16           # conv2 output channels (logical)
MAX_BT = 8        # images per grid step (whole batch in one step when batch <= 8)
POOL_ROWS = 8     # sublane-padded row count of the pooling matrix / pooled block

_VMEM = pl.BlockSpec(memory_space=pltpu.MemorySpace.VMEM)
_COMPILER_PARAMS = pltpu.CompilerParams(
    dimension_semantics=("parallel",),       # batch-tile grid axis (2-TC sharding on v7x)
    vmem_limit_bytes=32 * 1024 * 1024,       # safe on v5e/v6e (128 MiB) and v7x (64 MiB)
)


def _round_up(x, m):
    return (x + m - 1) // m * m


# ---------------------------------------------------------------------------
# Fused encoder kernel: conv1 + ReLU + conv2 + ReLU + pool + FC, Bt images/step
# ---------------------------------------------------------------------------
def _encoder_kernel(lhs1_ref, w1_ref, w2_ref, b2_ref, pool_ref, fcw_ref, fcb_ref,
                    o_ref, slab_ref, *, wp1, r2, bt, pool_scale):
    """All refs are VMEM blocks for one batch tile of `bt` images.

    lhs1_ref: (bt*rows1p, K1p)   K-packed conv1 im2col in padded-h1 row layout (bf16)
    w1_ref:   (K1p, 128)         conv1 weights, bias folded in as last real row (bf16)
    w2_ref:   (9, 128, 128)      per-tap conv2 weights (bf16)
    b2_ref:   (1, 128)           conv2 bias (f32)
    pool_ref: (8, r2)            0/1 stride-2-subsample + avg-pool selection matrix (bf16)
    fcw_ref:  (128, 128)         encoder Linear weights (bf16)
    fcb_ref:  (1, 128)           encoder Linear bias (f32)
    o_ref:    (bt, 128)          encoder latent for this batch tile (f32)
    slab_ref: (bt*rows1p, 128)   VMEM scratch: zero-padded conv1 activation slab (bf16)
    """
    # conv1 (3x3 / stride 2) as ONE K-packed GEMM over all bt images.  The bias comes
    # in through the im2col ones-column, so the zero halo rows stay exactly zero and
    # padding=1 semantics for conv2 are preserved without any masking.
    h1 = jnp.dot(lhs1_ref[...], w1_ref[...], preferred_element_type=jnp.float32)
    slab_ref[...] = jnp.maximum(h1, 0.0).astype(jnp.bfloat16)

    # conv2 (3x3 / stride 2) as a *stride-1* conv over the whole padded slab: 9
    # shifted-tap GEMMs with static, contiguous row windows of the VMEM scratch.
    # Positions that straddle halos / image boundaries are garbage but get pooling
    # weight 0; the stride-2 subsample is folded into the pooling matrix.
    acc = jnp.zeros((r2, LANES), jnp.float32)
    for kh in range(3):
        for kw in range(3):
            off = kh * wp1 + kw
            acc = acc + jnp.dot(slab_ref[off:off + r2, :], w2_ref[kh * 3 + kw],
                                preferred_element_type=jnp.float32)
    h2 = jnp.maximum(acc + b2_ref[...], 0.0).astype(jnp.bfloat16)     # (r2, 128)

    # Stride-2 selection + global average pool as one MXU matmul against a 0/1 matrix
    # (precomputed host-side); exact 1/(ho2*wo2) scaling applied afterwards in f32.
    pooled = jnp.dot(pool_ref[...], h2,
                     preferred_element_type=jnp.float32) * pool_scale  # (8, 128)
    latent = jnp.dot(pooled.astype(jnp.bfloat16), fcw_ref[...],
                     preferred_element_type=jnp.float32) + fcb_ref[...]
    o_ref[...] = latent[:bt]


# ---------------------------------------------------------------------------
# Head kernel: BatchNorm1d (batch stats) -> LeakyReLU -> Linear (whole batch)
# ---------------------------------------------------------------------------
def _head_kernel(h_ref, g_ref, bta_ref, wc_ref, bc_ref, o_ref, *, eps, slope):
    h = h_ref[...]                                                    # (N, 128) f32
    mean = jnp.mean(h, axis=0, keepdims=True)
    var = jnp.mean((h - mean) ** 2, axis=0, keepdims=True)            # biased (train mode)
    y = (h - mean) * jax.lax.rsqrt(var + eps) * g_ref[...] + bta_ref[...]
    y = jnp.where(y >= 0.0, y, slope * y)
    o_ref[...] = jnp.dot(y.astype(jnp.bfloat16), wc_ref[...],
                         preferred_element_type=jnp.float32) + bc_ref[...]


def _head(latent, gamma, beta, wc, bc, eps=1e-5, slope=0.01):
    n = latent.shape[0]
    ncp = wc.shape[1]
    return pl.pallas_call(
        functools.partial(_head_kernel, eps=eps, slope=slope),
        out_shape=jax.ShapeDtypeStruct((n, ncp), jnp.float32),
        in_specs=[_VMEM] * 5,
        out_specs=_VMEM,
    )(latent, gamma, beta, wc, bc)


# ---------------------------------------------------------------------------
# Full forward pass
# ---------------------------------------------------------------------------
@functools.partial(jax.jit, static_argnames=("n_classes", "lr_cf"))
def image_classifier_forward(q, x_nchw, *, n_classes, lr_cf=0.01):
    n, cin, h, w = x_nchw.shape
    assert h % 4 == 0 and w % 4 == 0 and h >= 8 and w >= 8, "demo supports H,W % 4 == 0, >= 8"
    ho1, wo1 = h // 2, w // 2                    # conv1 output spatial
    ho2, wo2 = ho1 // 2, wo1 // 2                # conv2 output spatial
    hp1, wp1 = ho1 + 2, wo1 + 2                  # conv1 output + padding-1 halo
    rows1 = hp1 * wp1
    rows1p = _round_up(rows1, 8)                 # per-image slab rows (8-aligned)
    k1p = q["w1"].shape[0]
    assert k1p == _round_up(9 * cin + 1, 8), "input channels mismatch prepared w1"

    # --- batch tiling: Bt images per grid step --------------------------------------
    # (For batch > MAX_BT the grid has ceil(n/Bt) steps; on v7x an even step count
    #  balances the two TensorCores.)
    if n <= MAX_BT:
        bt, n_pad = n, n
    else:
        bt = MAX_BT
        n_pad = _round_up(n, bt)
    grid_n = n_pad // bt
    slab_rows = bt * rows1p
    r2 = (slab_rows - 2 * wp1 - 2) // 8 * 8      # stride-1 conv2 rows computed per step

    # --- conv1 im2col: K-packed taps + a ones-column (folds the bias into the GEMM),
    #     embedded directly in the zero-padded h1 row layout (halo rows are all-zero,
    #     so the conv1 GEMM writes the zero padding "for free").  Stored bf16.
    x = jnp.transpose(x_nchw, (0, 2, 3, 1))                              # NHWC
    if n_pad > n:
        x = jnp.pad(x, ((0, n_pad - n), (0, 0), (0, 0), (0, 0)))
    xp = jnp.pad(x, ((0, 0), (1, 1), (1, 1), (0, 0)))
    taps = [xp[:, kh:kh + 2 * ho1:2, kw:kw + 2 * wo1:2, :]
            for kh in range(3) for kw in range(3)]
    taps.append(jnp.ones((n_pad, ho1, wo1, 1), x.dtype))                 # bias column
    patches = jnp.concatenate(taps, axis=-1)                             # (N, ho1, wo1, 9*cin+1)
    patches = jnp.pad(patches,
                      ((0, 0), (1, 1), (1, 1), (0, k1p - patches.shape[-1])))
    lhs1 = patches.reshape(n_pad, rows1, k1p)
    if rows1p > rows1:
        lhs1 = jnp.pad(lhs1, ((0, 0), (0, rows1p - rows1), (0, 0)))
    lhs1 = lhs1.reshape(n_pad * rows1p, k1p).astype(jnp.bfloat16)

    # --- pooling matrix (host-side constant): selects the stride-2 conv2 positions of
    #     each image with weight 1.0; scaled by 1/(ho2*wo2) in f32 inside the kernel.
    pool_np = np.zeros((POOL_ROWS, r2), np.float32)
    for b in range(bt):
        base = b * rows1p
        for i2 in range(ho2):
            for j2 in range(wo2):
                pool_np[b, base + 2 * i2 * wp1 + 2 * j2] = 1.0
    pool = jnp.asarray(pool_np, jnp.bfloat16)

    latent = pl.pallas_call(
        functools.partial(_encoder_kernel, wp1=wp1, r2=r2, bt=bt,
                          pool_scale=1.0 / (ho2 * wo2)),
        out_shape=jax.ShapeDtypeStruct((n_pad, LANES), jnp.float32),
        grid=(grid_n,),
        in_specs=[
            pl.BlockSpec((slab_rows, k1p), lambda i: (i, 0)),            # im2col (per tile)
            pl.BlockSpec((k1p, LANES), lambda i: (0, 0)),                # w1 (resident)
            pl.BlockSpec((9, LANES, LANES), lambda i: (0, 0, 0)),        # w2 (resident)
            pl.BlockSpec((1, LANES), lambda i: (0, 0)),                  # b2
            pl.BlockSpec((POOL_ROWS, r2), lambda i: (0, 0)),             # pool matrix
            pl.BlockSpec((LANES, LANES), lambda i: (0, 0)),              # fc_w
            pl.BlockSpec((1, LANES), lambda i: (0, 0)),                  # fc_b
        ],
        out_specs=pl.BlockSpec((bt, LANES), lambda i: (i, 0)),
        scratch_shapes=[pltpu.VMEM((slab_rows, LANES), jnp.bfloat16)],
        compiler_params=_COMPILER_PARAMS,
    )(lhs1, q["w1"], q["w2"], q["b2"], pool, q["fc_w"], q["fc_b"])

    latent = latent[:n]                                                  # drop batch padding
    logits_p = _head(latent, q["bn_gamma"], q["bn_beta"], q["cls_w"], q["cls_b"],
                     slope=lr_cf)                                        # (N, 128) lane-padded
    return logits_p[:, :n_classes]


# ---------------------------------------------------------------------------
# Parameters (PyTorch layout) + conversion to padded, MXU-ready operands
# ---------------------------------------------------------------------------
def init_params(key, latent_dim=128, n_classes=8, c1=C1, c2=C2, cin=3):
    """PyTorch-layout parameters (Conv: (Cout, Cin, kh, kw); Linear as (in, out))."""
    ks = jax.random.split(key, 8)
    return {
        "conv1_w": 0.1 * jax.random.normal(ks[0], (c1, cin, 3, 3), jnp.float32),
        "conv1_b": 0.01 * jax.random.normal(ks[1], (c1,), jnp.float32),
        "conv2_w": 0.1 * jax.random.normal(ks[2], (c2, c1, 3, 3), jnp.float32),
        "conv2_b": 0.01 * jax.random.normal(ks[3], (c2,), jnp.float32),
        "fc_w": 0.1 * jax.random.normal(ks[4], (c2, latent_dim), jnp.float32),
        "fc_b": 0.01 * jax.random.normal(ks[5], (latent_dim,), jnp.float32),
        "bn_gamma": jnp.ones((latent_dim,), jnp.float32),   # PyTorch BN defaults
        "bn_beta": jnp.zeros((latent_dim,), jnp.float32),
        "cls_w": 0.1 * jax.random.normal(ks[6], (latent_dim, n_classes), jnp.float32),
        "cls_b": 0.01 * jax.random.normal(ks[7], (n_classes,), jnp.float32),
    }


def prep_params(p):
    """Convert PyTorch-layout params to lane/K-padded bf16 (hot) / f32 (bias) operands."""
    c1, cin = p["conv1_w"].shape[0], p["conv1_w"].shape[1]
    c2 = p["conv2_w"].shape[0]
    latent = p["fc_w"].shape[1]
    n_classes = p["cls_w"].shape[1]
    assert latent == LANES, "latent_dim must equal 128 in this demo"
    k1 = 9 * cin + 1
    k1p = _round_up(k1, 8)

    # conv1: (Cout, Cin, 3, 3) -> (kh, kw, cin, cout) -> (27, Cout); append bias row
    # (consumed by the im2col ones-column); pad K -> k1p and Cout -> 128.  bf16.
    w1 = jnp.transpose(p["conv1_w"], (2, 3, 1, 0)).reshape(9 * cin, c1)
    w1 = jnp.concatenate([w1, p["conv1_b"][None, :]], axis=0)
    w1 = jnp.pad(w1, ((0, k1p - k1), (0, LANES - c1))).astype(jnp.bfloat16)

    # conv2: (Cout, Cin, 3, 3) -> (9, Cin, Cout), padded to (9, 128, 128).  bf16.
    w2 = jnp.transpose(p["conv2_w"], (2, 3, 1, 0)).reshape(9, c1, c2)
    w2 = jnp.pad(w2, ((0, 0), (0, LANES - c1), (0, LANES - c2))).astype(jnp.bfloat16)

    def row(v, width=None):
        if width is not None:
            v = jnp.pad(v, (0, width - v.shape[0]))
        return v[None, :].astype(jnp.float32)

    return {
        "w1": w1,
        "w2": w2,
        "b2": row(p["conv2_b"], LANES),
        "fc_w": jnp.pad(p["fc_w"], ((0, LANES - c2), (0, 0))).astype(jnp.bfloat16),
        "fc_b": row(p["fc_b"]),
        "bn_gamma": row(p["bn_gamma"]),
        "bn_beta": row(p["bn_beta"]),
        "cls_w": jnp.pad(p["cls_w"], ((0, 0), (0, LANES - n_classes))).astype(jnp.bfloat16),
        "cls_b": row(p["cls_b"], LANES),
    }


if __name__ == "__main__":
    key = jax.random.PRNGKey(0)
    k_x, k_p = jax.random.split(key)

    batch, channels, hw = 2, 3, 16
    latent_dim, n_classes = 128, 8              # latent_dim=128 is the module's default

    x = jax.random.normal(k_x, (batch, channels, hw, hw), jnp.float32)   # NCHW like PyTorch
    params = init_params(k_p, latent_dim=latent_dim, n_classes=n_classes)
    q = prep_params(params)

    logits = image_classifier_forward(q, x, n_classes=n_classes)
    jax.block_until_ready(logits)

    assert logits.shape == (batch, n_classes), logits.shape
    assert bool(jnp.all(jnp.isfinite(logits))), "non-finite logits"
    print("KERNEL_OK")
</pallas_src>

<mosaic_0001>
module attributes {stable_mosaic.version = 11 : i64} {
  func.func @_head_kernel(%arg0: memref<2x128xf32, #tpu.memory_space<vmem>>, %arg1: memref<1x128xf32, #tpu.memory_space<vmem>>, %arg2: memref<1x128xf32, #tpu.memory_space<vmem>>, %arg3: memref<128x128xbf16, #tpu.memory_space<vmem>>, %arg4: memref<1x128xf32, #tpu.memory_space<vmem>>, %arg5: memref<2x128xf32, #tpu.memory_space<vmem>>) attributes {dimension_semantics = [], scalar_prefetch = 0 : i64, scratch_operands = 0 : i64, tpu.core_type = #tpu.core_type<tc>} {
    %c0 = arith.constant 0 : index
    %c0_0 = arith.constant 0 : index
    %0 = vector.load %arg0[%c0, %c0_0] : memref<2x128xf32, #tpu.memory_space<vmem>>, vector<2x128xf32>
    %cst = arith.constant dense<0.000000e+00> : vector<128xf32>
    %1 = vector.multi_reduction <add>, %0, %cst [0] : vector<2x128xf32> to vector<128xf32>
    %2 = vector.shape_cast %1 : vector<128xf32> to vector<1x128xf32>
    %cst_1 = arith.constant 2.000000e+00 : f32
    %3 = vector.broadcast %cst_1 : f32 to vector<1x128xf32>
    %4 = arith.divf %2, %3 : vector<1x128xf32>
    %5 = vector.broadcast %4 : vector<1x128xf32> to vector<2x128xf32>
    %6 = arith.subf %0, %5 : vector<2x128xf32>
    %7 = arith.mulf %6, %6 : vector<2x128xf32>
    %cst_2 = arith.constant dense<0.000000e+00> : vector<128xf32>
    %8 = vector.multi_reduction <add>, %7, %cst_2 [0] : vector<2x128xf32> to vector<128xf32>
    %9 = vector.shape_cast %8 : vector<128xf32> to vector<1x128xf32>
    %cst_3 = arith.constant 2.000000e+00 : f32
    %10 = vector.broadcast %cst_3 : f32 to vector<1x128xf32>
    %11 = arith.divf %9, %10 : vector<1x128xf32>
    %12 = vector.broadcast %4 : vector<1x128xf32> to vector<2x128xf32>
    %13 = arith.subf %0, %12 : vector<2x128xf32>
    %cst_4 = arith.constant 9.99999974E-6 : f32
    %14 = vector.broadcast %cst_4 : f32 to vector<1x128xf32>
    %15 = arith.addf %11, %14 : vector<1x128xf32>
    %16 = math.rsqrt %15 : vector<1x128xf32>
    %17 = vector.broadcast %16 : vector<1x128xf32> to vector<2x128xf32>
    %18 = arith.mulf %13, %17 : vector<2x128xf32>
    %c0_5 = arith.constant 0 : index
    %c0_6 = arith.constant 0 : index
    %19 = vector.load %arg1[%c0_5, %c0_6] : memref<1x128xf32, #tpu.memory_space<vmem>>, vector<1x128xf32>
    %20 = vector.broadcast %19 : vector<1x128xf32> to vector<2x128xf32>
    %21 = arith.mulf %18, %20 : vector<2x128xf32>
    %c0_7 = arith.constant 0 : index
    %c0_8 = arith.constant 0 : index
    %22 = vector.load %arg2[%c0_7, %c0_8] : memref<1x128xf32, #tpu.memory_space<vmem>>, vector<1x128xf32>
    %23 = vector.broadcast %22 : vector<1x128xf32> to vector<2x128xf32>
    %24 = arith.addf %21, %23 : vector<2x128xf32>
    %cst_9 = arith.constant 0.000000e+00 : f32
    %25 = vector.broadcast %cst_9 : f32 to vector<2x128xf32>
    %26 = arith.cmpf oge, %24, %25 : vector<2x128xf32>
    %cst_10 = arith.constant 0.00999999977 : f32
    %27 = vector.broadcast %cst_10 : f32 to vector<2x128xf32>
    %28 = arith.mulf %27, %24 : vector<2x128xf32>
    %29 = arith.select %26, %24, %28 : vector<2x128xi1>, vector<2x128xf32>
    %30 = arith.truncf %29 : vector<2x128xf32> to vector<2x128xbf16>
    %c0_11 = arith.constant 0 : index
    %c0_12 = arith.constant 0 : index
    %31 = vector.load %arg3[%c0_11, %c0_12] : memref<128x128xbf16, #tpu.memory_space<vmem>>, vector<128x128xbf16>
    %cst_13 = arith.constant dense<0.000000e+00> : vector<2x128xf32>
    %32 = tpu.matmul %30, %31, %cst_13 {dimension_numbers = #tpu.dot_dimension_numbers<[1], [0], [0], [1], [0, 0, 1, 1], [], []>} : vector<2x128xbf16>, vector<128x128xbf16>, vector<2x128xf32> -> vector<2x128xf32>
    %c0_14 = arith.constant 0 : index
    %c0_15 = arith.constant 0 : index
    %33 = vector.load %arg4[%c0_14, %c0_15] : memref<1x128xf32, #tpu.memory_space<vmem>>, vector<1x128xf32>
    %34 = vector.broadcast %33 : vector<1x128xf32> to vector<2x128xf32>
    %35 = arith.addf %32, %34 : vector<2x128xf32>
    %c0_16 = arith.constant 0 : index
    %c0_17 = arith.constant 0 : index
    %36 = vector.load %arg5[%c0_16, %c0_17] : memref<2x128xf32, #tpu.memory_space<vmem>>, vector<2x128xf32>
    tpu.vector_store %arg5[%c0_16, %c0_17], %35 {strides = array<i32>} : memref<2x128xf32, #tpu.memory_space<vmem>>, vector<2x128xf32>,
    return
  }
}

module attributes {stable_mosaic.version = 11 : i64} {
  func.func @_encoder_kernel(%arg0: i32, %arg1: memref<208x32xbf16, #tpu.memory_space<vmem>>, %arg2: memref<32x128xbf16, #tpu.memory_space<vmem>>, %arg3: memref<9x128x128xbf16, #tpu.memory_space<vmem>>, %arg4: memref<1x128xf32, #tpu.memory_space<vmem>>, %arg5: memref<8x184xbf16, #tpu.memory_space<vmem>>, %arg6: memref<128x128xbf16, #tpu.memory_space<vmem>>, %arg7: memref<1x128xf32, #tpu.memory_space<vmem>>, %arg8: memref<2x128xf32, #tpu.memory_space<vmem>>, %arg9: memref<208x128xbf16, #tpu.memory_space<vmem>>) attributes {dimension_semantics = [#tpu.dimension_semantics<parallel>], iteration_bounds = array<i64: 1>, scalar_prefetch = 0 : i64, scratch_operands = 1 : i64, tpu.core_type = #tpu.core_type<tc>, window_params = [{transform_indices = @transform_0, window_bounds = array<i64: 208, 32>}, {pipeline_mode = #tpu.pipeline_mode<synchronous>, transform_indices = @transform_1, window_bounds = array<i64: 32, 128>}, {pipeline_mode = #tpu.pipeline_mode<synchronous>, transform_indices = @transform_2, window_bounds = array<i64: 9, 128, 128>}, {pipeline_mode = #tpu.pipeline_mode<synchronous>, transform_indices = @transform_3, window_bounds = array<i64: 1, 128>}, {pipeline_mode = #tpu.pipeline_mode<synchronous>, transform_indices = @transform_4, window_bounds = array<i64: 8, 184>}, {pipeline_mode = #tpu.pipeline_mode<synchronous>, transform_indices = @transform_5, window_bounds = array<i64: 128, 128>}, {pipeline_mode = #tpu.pipeline_mode<synchronous>, transform_indices = @transform_6, window_bounds = array<i64: 1, 128>}, {transform_indices = @transform_7, window_bounds = array<i64: 2, 128>}]} {
    %c0 = arith.constant 0 : index
    %c0_0 = arith.constant 0 : index
    %0 = vector.load %arg1[%c0, %c0_0] : memref<208x32xbf16, #tpu.memory_space<vmem>>, vector<208x32xbf16>
    %c0_1 = arith.constant 0 : index
    %c0_2 = arith.constant 0 : index
    %1 = vector.load %arg2[%c0_1, %c0_2] : memref<32x128xbf16, #tpu.memory_space<vmem>>, vector<32x128xbf16>
    %cst = arith.constant dense<0.000000e+00> : vector<208x128xf32>
    %2 = tpu.matmul %0, %1, %cst {dimension_numbers = #tpu.dot_dimension_numbers<[1], [0], [0], [1], [0, 0, 1, 1], [], []>} : vector<208x32xbf16>, vector<32x128xbf16>, vector<208x128xf32> -> vector<208x128xf32>
    %cst_3 = arith.constant 0.000000e+00 : f32
    %3 = vector.broadcast %cst_3 : f32 to vector<208x128xf32>
    %4 = arith.maximumf %2, %3 : vector<208x128xf32>
    %5 = arith.truncf %4 : vector<208x128xf32> to vector<208x128xbf16>
    %c0_4 = arith.constant 0 : index
    %c0_5 = arith.constant 0 : index
    %6 = vector.load %arg9[%c0_4, %c0_5] : memref<208x128xbf16, #tpu.memory_space<vmem>>, vector<208x128xbf16>
    tpu.vector_store %arg9[%c0_4, %c0_5], %5 {strides = array<i32>} : memref<208x128xbf16, #tpu.memory_space<vmem>>, vector<208x128xbf16>,
    %cst_6 = arith.constant 0.000000e+00 : f32
    %7 = vector.broadcast %cst_6 : f32 to vector<184x128xf32>
    %c0_7 = arith.constant 0 : index
    %c0_8 = arith.constant 0 : index
    %8 = vector.load %arg9[%c0_7, %c0_8] : memref<208x128xbf16, #tpu.memory_space<vmem>>, vector<184x128xbf16>
    %c0_9 = arith.constant 0 : index
    %c0_10 = arith.constant 0 : index
    %c0_11 = arith.constant 0 : index
    %9 = vector.load %arg3[%c0_9, %c0_10, %c0_11] : memref<9x128x128xbf16, #tpu.memory_space<vmem>>, vector<1x128x128xbf16>
    %10 = vector.shape_cast %9 : vector<1x128x128xbf16> to vector<128x128xbf16>
    %cst_12 = arith.constant dense<0.000000e+00> : vector<184x128xf32>
    %11 = tpu.matmul %8, %10, %cst_12 {dimension_numbers = #tpu.dot_dimension_numbers<[1], [0], [0], [1], [0, 0, 1, 1], [], []>} : vector<184x128xbf16>, vector<128x128xbf16>, vector<184x128xf32> -> vector<184x128xf32>
    %12 = arith.addf %7, %11 : vector<184x128xf32>
    %c1 = arith.constant 1 : index
    %c0_13 = arith.constant 0 : index
    %13 = vector.load %arg9[%c1, %c0_13] : memref<208x128xbf16, #tpu.memory_space<vmem>>, vector<184x128xbf16>
    %c1_14 = arith.constant 1 : index
    %c0_15 = arith.constant 0 : index
    %c0_16 = arith.constant 0 : index
    %14 = vector.load %arg3[%c1_14, %c0_15, %c0_16] : memref<9x128x128xbf16, #tpu.memory_space<vmem>>, vector<1x128x128xbf16>
    %15 = vector.shape_cast %14 : vector<1x128x128xbf16> to vector<128x128xbf16>
    %cst_17 = arith.constant dense<0.000000e+00> : vector<184x128xf32>
    %16 = tpu.matmul %13, %15, %cst_17 {dimension_numbers = #tpu.dot_dimension_numbers<[1], [0], [0], [1], [0, 0, 1, 1], [], []>} : vector<184x128xbf16>, vector<128x128xbf16>, vector<184x128xf32> -> vector<184x128xf32>
    %17 = arith.addf %12, %16 : vector<184x128xf32>
    %c2 = arith.constant 2 : index
    %c0_18 = arith.constant 0 : index
    %18 = vector.load %arg9[%c2, %c0_18] : memref<208x128xbf16, #tpu.memory_space<vmem>>, vector<184x128xbf16>
    %c2_19 = arith.constant 2 : index
    %c0_20 = arith.constant 0 : index
    %c0_21 = arith.constant 0 : index
    %19 = vector.load %arg3[%c2_19, %c0_20, %c0_21] : memref<9x128x128xbf16, #tpu.memory_space<vmem>>, vector<1x128x128xbf16>
    %20 = vector.shape_cast %19 : vector<1x128x128xbf16> to vector<128x128xbf16>
    %cst_22 = arith.constant dense<0.000000e+00> : vector<184x128xf32>
    %21 = tpu.matmul %18, %20, %cst_22 {dimension_numbers = #tpu.dot_dimension_numbers<[1], [0], [0], [1], [0, 0, 1, 1], [], []>} : vector<184x128xbf16>, vector<128x128xbf16>, vector<184x128xf32> -> vector<184x128xf32>
    %22 = arith.addf %17, %21 : vector<184x128xf32>
    %c10 = arith.constant 10 : index
    %c0_23 = arith.constant 0 : index
    %23 = vector.load %arg9[%c10, %c0_23] : memref<208x128xbf16, #tpu.memory_space<vmem>>, vector<184x128xbf16>
    %c3 = arith.constant 3 : index
    %c0_24 = arith.constant 0 : index
    %c0_25 = arith.constant 0 : index
    %24 = vector.load %arg3[%c3, %c0_24, %c0_25] : memref<9x128x128xbf16, #tpu.memory_space<vmem>>, vector<1x128x128xbf16>
    %25 = vector.shape_cast %24 : vector<1x128x128xbf16> to vector<128x128xbf16>
    %cst_26 = arith.constant dense<0.000000e+00> : vector<184x128xf32>
    %26 = tpu.matmul %23, %25, %cst_26 {dimension_numbers = #tpu.dot_dimension_numbers<[1], [0], [0], [1], [0, 0, 1, 1], [], []>} : vector<184x128xbf16>, vector<128x128xbf16>, vector<184x128xf32> -> vector<184x128xf32>
    %27 = arith.addf %22, %26 : vector<184x128xf32>
    %c11 = arith.constant 11 : index
    %c0_27 = arith.constant 0 : index
    %28 = vector.load %arg9[%c11, %c0_27] : memref<208x128xbf16, #tpu.memory_space<vmem>>, vector<184x128xbf16>
    %c4 = arith.constant 4 : index
    %c0_28 = arith.constant 0 : index
    %c0_29 = arith.constant 0 : index
    %29 = vector.load %arg3[%c4, %c0_28, %c0_29] : memref<9x128x128xbf16, #tpu.memory_space<vmem>>, vector<1x128x128xbf16>
    %30 = vector.shape_cast %29 : vector<1x128x128xbf16> to vector<128x128xbf16>
    %cst_30 = arith.constant dense<0.000000e+00> : vector<184x128xf32>
    %31 = tpu.matmul %28, %30, %cst_30 {dimension_numbers = #tpu.dot_dimension_numbers<[1], [0], [0], [1], [0, 0, 1, 1], [], []>} : vector<184x128xbf16>, vector<128x128xbf16>, vector<184x128xf32> -> vector<184x128xf32>
    %32 = arith.addf %27, %31 : vector<184x128xf32>
    %c12 = arith.constant 12 : index
    %c0_31 = arith.constant 0 : index
    %33 = vector.load %arg9[%c12, %c0_31] : memref<208x128xbf16, #tpu.memory_space<vmem>>, vector<184x128xbf16>
    %c5 = arith.constant 5 : index
    %c0_32 = arith.constant 0 : index
    %c0_33 = arith.constant 0 : index
    %34 = vector.load %arg3[%c5, %c0_32, %c0_33] : memref<9x128x128xbf16, #tpu.memory_space<vmem>>, vector<1x128x128xbf16>
    %35 = vector.shape_cast %34 : vector<1x128x128xbf16> to vector<128x128xbf16>
    %cst_34 = arith.constant dense<0.000000e+00> : vector<184x128xf32>
    %36 = tpu.matmul %33, %35, %cst_34 {dimension_numbers = #tpu.dot_dimension_numbers<[1], [0], [0], [1], [0, 0, 1, 1], [], []>} : vector<184x128xbf16>, vector<128x128xbf16>, vector<184x128xf32> -> vector<184x128xf32>
    %37 = arith.addf %32, %36 : vector<184x128xf32>
    %c20 = arith.constant 20 : index
    %c0_35 = arith.constant 0 : index
    %38 = vector.load %arg9[%c20, %c0_35] : memref<208x128xbf16, #tpu.memory_space<vmem>>, vector<184x128xbf16>
    %c6 = arith.constant 6 : index
    %c0_36 = arith.constant 0 : index
    %c0_37 = arith.constant 0 : index
    %39 = vector.load %arg3[%c6, %c0_36, %c0_37] : memref<9x128x128xbf16, #tpu.memory_space<vmem>>, vector<1x128x128xbf16>
    %40 = vector.shape_cast %39 : vector<1x128x128xbf16> to vector<128x128xbf16>
    %cst_38 = arith.constant dense<0.000000e+00> : vector<184x128xf32>
    %41 = tpu.matmul %38, %40, %cst_38 {dimension_numbers = #tpu.dot_dimension_numbers<[1], [0], [0], [1], [0, 0, 1, 1], [], []>} : vector<184x128xbf16>, vector<128x128xbf16>, vector<184x128xf32> -> vector<184x128xf32>
    %42 = arith.addf %37, %41 : vector<184x128xf32>
    %c21 = arith.constant 21 : index
    %c0_39 = arith.constant 0 : index
    %43 = vector.load %arg9[%c21, %c0_39] : memref<208x128xbf16, #tpu.memory_space<vmem>>, vector<184x128xbf16>
    %c7 = arith.constant 7 : index
    %c0_40 = arith.constant 0 : index
    %c0_41 = arith.constant 0 : index
    %44 = vector.load %arg3[%c7, %c0_40, %c0_41] : memref<9x128x128xbf16, #tpu.memory_space<vmem>>, vector<1x128x128xbf16>
    %45 = vector.shape_cast %44 : vector<1x128x128xbf16> to vector<128x128xbf16>
    %cst_42 = arith.constant dense<0.000000e+00> : vector<184x128xf32>
    %46 = tpu.matmul %43, %45, %cst_42 {dimension_numbers = #tpu.dot_dimension_numbers<[1], [0], [0], [1], [0, 0, 1, 1], [], []>} : vector<184x128xbf16>, vector<128x128xbf16>, vector<184x128xf32> -> vector<184x128xf32>
    %47 = arith.addf %42, %46 : vector<184x128xf32>
    %c22 = arith.constant 22 : index
    %c0_43 = arith.constant 0 : index
    %48 = vector.load %arg9[%c22, %c0_43] : memref<208x128xbf16, #tpu.memory_space<vmem>>, vector<184x128xbf16>
    %c8 = arith.constant 8 : index
    %c0_44 = arith.constant 0 : index
    %c0_45 = arith.constant 0 : index
    %49 = vector.load %arg3[%c8, %c0_44, %c0_45] : memref<9x128x128xbf16, #tpu.memory_space<vmem>>, vector<1x128x128xbf16>
    %50 = vector.shape_cast %49 : vector<1x128x128xbf16> to vector<128x128xbf16>
    %cst_46 = arith.constant dense<0.000000e+00> : vector<184x128xf32>
    %51 = tpu.matmul %48, %50, %cst_46 {dimension_numbers = #tpu.dot_dimension_numbers<[1], [0], [0], [1], [0, 0, 1, 1], [], []>} : vector<184x128xbf16>, vector<128x128xbf16>, vector<184x128xf32> -> vector<184x128xf32>
    %52 = arith.addf %47, %51 : vector<184x128xf32>
    %c0_47 = arith.constant 0 : index
    %c0_48 = arith.constant 0 : index
    %53 = vector.load %arg4[%c0_47, %c0_48] : memref<1x128xf32, #tpu.memory_space<vmem>>, vector<1x128xf32>
    %54 = vector.broadcast %53 : vector<1x128xf32> to vector<184x128xf32>
    %55 = arith.addf %52, %54 : vector<184x128xf32>
    %cst_49 = arith.constant 0.000000e+00 : f32
    %56 = vector.broadcast %cst_49 : f32 to vector<184x128xf32>
    %57 = arith.maximumf %55, %56 : vector<184x128xf32>
    %58 = arith.truncf %57 : vector<184x128xf32> to vector<184x128xbf16>
    %c0_50 = arith.constant 0 : index
    %c0_51 = arith.constant 0 : index
    %59 = vector.load %arg5[%c0_50, %c0_51] : memref<8x184xbf16, #tpu.memory_space<vmem>>, vector<8x184xbf16>
    %cst_52 = arith.constant dense<0.000000e+00> : vector<8x128xf32>
    %60 = tpu.matmul %59, %58, %cst_52 {dimension_numbers = #tpu.dot_dimension_numbers<[1], [0], [0], [1], [0, 0, 1, 1], [], []>} : vector<8x184xbf16>, vector<184x128xbf16>, vector<8x128xf32> -> vector<8x128xf32>
    %cst_53 = arith.constant 6.250000e-02 : f32
    %61 = vector.broadcast %cst_53 : f32 to vector<8x128xf32>
    %62 = arith.mulf %60, %61 : vector<8x128xf32>
    %63 = arith.truncf %62 : vector<8x128xf32> to vector<8x128xbf16>
    %c0_54 = arith.constant 0 : index
    %c0_55 = arith.constant 0 : index
    %64 = vector.load %arg6[%c0_54, %c0_55] : memref<128x128xbf16, #tpu.memory_space<vmem>>, vector<128x128xbf16>
    %cst_56 = arith.constant dense<0.000000e+00> : vector<8x128xf32>
    %65 = tpu.matmul %63, %64, %cst_56 {dimension_numbers = #tpu.dot_dimension_numbers<[1], [0], [0], [1], [0, 0, 1, 1], [], []>} : vector<8x128xbf16>, vector<128x128xbf16>, vector<8x128xf32> -> vector<8x128xf32>
    %c0_57 = arith.constant 0 : index
    %c0_58 = arith.constant 0 : index
    %66 = vector.load %arg7[%c0_57, %c0_58] : memref<1x128xf32, #tpu.memory_space<vmem>>, vector<1x128xf32>
    %67 = vector.broadcast %66 : vector<1x128xf32> to vector<8x128xf32>
    %68 = arith.addf %65, %67 : vector<8x128xf32>
    %69 = vector.extract_strided_slice %68 {offsets = [0, 0], sizes = [2, 128], strides = [1, 1]} : vector<8x128xf32> to vector<2x128xf32>
    %c0_59 = arith.constant 0 : index
    %c0_60 = arith.constant 0 : index
    %70 = vector.load %arg8[%c0_59, %c0_60] : memref<2x128xf32, #tpu.memory_space<vmem>>, vector<2x128xf32>
    tpu.vector_store %arg8[%c0_59, %c0_60], %69 {strides = array<i32>} : memref<2x128xf32, #tpu.memory_space<vmem>>, vector<2x128xf32>,
    return
  }
  func.func @transform_0(%arg0: i32) -> (i32, i32) {
    %c0_i32 = arith.constant 0 : i32
    %c0_i32_0 = arith.constant 0 : i32
    return %arg0, %c0_i32 : i32, i32
  }
  func.func @transform_1(%arg0: i32) -> (i32, i32) {
    %c0_i32 = arith.constant 0 : i32
    %c0_i32_0 = arith.constant 0 : i32
    %c0_i32_1 = arith.constant 0 : i32
    return %c0_i32, %c0_i32_0 : i32, i32
  }
  func.func @transform_2(%arg0: i32) -> (i32, i32, i32) {
    %c0_i32 = arith.constant 0 : i32
    %c0_i32_0 = arith.constant 0 : i32
    %c0_i32_1 = arith.constant 0 : i32
    %c0_i32_2 = arith.constant 0 : i32
    return %c0_i32, %c0_i32_0, %c0_i32_1 : i32, i32, i32
  }
  func.func @transform_3(%arg0: i32) -> (i32, i32) {
    %c0_i32 = arith.constant 0 : i32
    %c0_i32_0 = arith.constant 0 : i32
    %c0_i32_1 = arith.constant 0 : i32
    return %c0_i32, %c0_i32_0 : i32, i32
  }
  func.func @transform_4(%arg0: i32) -> (i32, i32) {
    %c0_i32 = arith.constant 0 : i32
    %c0_i32_0 = arith.constant 0 : i32
    %c0_i32_1 = arith.constant 0 : i32
    return %c0_i32, %c0_i32_0 : i32, i32
  }
  func.func @transform_5(%arg0: i32) -> (i32, i32) {
    %c0_i32 = arith.constant 0 : i32
    %c0_i32_0 = arith.constant 0 : i32
    %c0_i32_1 = arith.constant 0 : i32
    return %c0_i32, %c0_i32_0 : i32, i32
  }
  func.func @transform_6(%arg0: i32) -> (i32, i32) {
    %c0_i32 = arith.constant 0 : i32
    %c0_i32_0 = arith.constant 0 : i32
    %c0_i32_1 = arith.constant 0 : i32
    return %c0_i32, %c0_i32_0 : i32, i32
  }
  func.func @transform_7(%arg0: i32) -> (i32, i32) {
    %c0_i32 = arith.constant 0 : i32
    %c0_i32_0 = arith.constant 0 : i32
    return %arg0, %c0_i32 : i32, i32
  }
}

</mosaic_0001>

<bundles_post_ra>
// kernel: image_classifier_forward.3
= control target key start
LH: loop header
LB: loop body
LE: loop exit
PB: predicated region body
PF: predicated region fallthrough
CT: control target
= control target key end

     0   :  { %v269_v1 = vmov 0.0   ;;  %vm270_vm0 = vmmov 0   ;;  %vm23_vm1 = vcmask 1041408   ;;  %s352_s0 = inlined_call_operand.vmem [shape: f32[2,128], index: 0, kind: input, shape index: {}]   ;;  %s353_s1 = inlined_call_operand.vmem [shape: f32[1,128], index: 1, kind: input, shape index: {}]   ;;  %s354_s2 = inlined_call_operand.vmem [shape: f32[1,128], index: 2, kind: input, shape index: {}]   ;;  %s355_s3 = inlined_call_operand.vmem [shape: bf16[128,128], index: 3, kind: input, shape index: {}]   ;;  %s356_s4 = inlined_call_operand.vmem [shape: f32[1,128], index: 4, kind: input, shape index: {}]   ;;  %s357_s5 = inlined_call_operand.hbm [shape: f32[2,128], index: 5, kind: output, shape index: {}]  }
   0x1   :  { %v235_v0 = vld [vmem:[%s355_s3] sm:$0xff]   ;;  %212 = vmatprep.subr.bf16.mxu0 %v269_v1  ;;  %v236_v2 = vld [vmem:[%s355_s3 + $0x8] sm:$0xff]   ;;  %228 = vmatprep.mubr.msk.bf16.mxu0 %vm270_vm0, %v269_v1  ;;  %v237_v3 = vld [vmem:[%s355_s3 + $0x10] sm:$0xff]  }
   0x2   :  { %213 = vmatpush3.bf16.msra.mxu0 %v235_v0  ;;  %v22_v4 = vld [vmem:[%s352_s0] sm:$0x3] }
   0x3   :  { %214 = vmatprep.subr.bf16.mxu0 %v269_v1  ;;  %v24_v5 = vsel %vm23_vm1, %v22_v4, 0.0 }
   0x6   :  { %215 = vmatpush3.bf16.msra.mxu0 %v236_v2 }
   0x7   :  { %216 = vmatprep.subr.bf16.mxu0 %v269_v1 }
   0x8   :  { %10 = vsyncpa [#allocation3], 0  ;;  %v238_v6 = vld [vmem:[%s355_s3 + $0x18] sm:$0xff]   ;;  %v25_v7 = vrot.slane %v24_v5, 4  ;;  %v239_v9 = vld [vmem:[%s355_s3 + $0x20] sm:$0xff]   ;;  %s271_s15 = smov [#allocation2]  }
   0x9   :  { %v240_v12 = vld [vmem:[%s355_s3 + $0x28] sm:$0xff]   ;;  %v241_v15 = vld [vmem:[%s355_s3 + $0x30] sm:$0xff]   ;;  %v242_v18 = vld [vmem:[%s355_s3 + $0x38] sm:$0xff]   ;;  %s184_s16 = sshll.u32 %s271_s15, 4  ;;  %s185_s16 = int_to_ptr.vmem [resolvable:$true] %s184_s16 }
   0xa   :  { %217 = vmatpush3.bf16.msra.mxu0 %v237_v3  ;;  %v26_v8 = vadd.f32 %v25_v7, %v24_v5  ;;  %v192_v30 = vld [vmem:[%s353_s1] ss:$0 sm:$0xff]  ;;  %s245_s1 = scalar_lea.vmem %s185_s16, 32  ;;  %p250_p1 = scmp.lt.s32.totalorder %s185_s16, %s185_s16 }
   0xb   :  { %218 = vmatprep.subr.bf16.mxu0 %v269_v1  ;;  %v193_v32 = vld [vmem:[%s354_s2] ss:$0 sm:$0xff]  ;;  %p246_p0 = scmp.ne.s32.totalorder %s185_s16, %s245_s1  ;;  %p251_p2 = scmp.lt.s32.totalorder %s245_s1, %s245_s1 }
   0xc   :  { %v27_v10 = vrot.slane %v26_v8, 2  ;;  %v194_v38 = vld [vmem:[%s356_s4] ss:$0 sm:$0xff] }
   0xd   :  { %p252_p3 = por %p251_p2, %p250_p1 }
   0xe   :  { %219 = vmatpush3.bf16.msra.mxu0 %v238_v6  ;;  %v28_v11 = vadd.f32 %v27_v10, %v26_v8 }
   0xf   :  { %220 = vmatprep.subr.bf16.mxu0 %v269_v1  ;;  %p253_p4 = pnand %p252_p3, %p246_p0 }
  0x10   :  { %v29_v13 = vrot.slane %v28_v11, 1 }
  0x12   :  { %221 = vmatpush3.bf16.msra.mxu0 %v239_v9  ;;  %v30_v14 = vadd.f32 %v29_v13, %v28_v11 }
  0x13   :  { %222 = vmatprep.subr.bf16.mxu0 %v269_v1 }
  0x14   :  { %v32_v16 = vmul.f32 0.5, %v30_v14 }
  0x16   :  { %223 = vmatpush3.bf16.msra.mxu0 %v240_v12  ;;  %v33_v17 = vsub.f32 %v22_v4, %v32_v16 }
  0x17   :  { %224 = vmatprep.subr.bf16.mxu0 %v269_v1 }
  0x18   :  { %v34_v19 = vmul.f32 %v33_v17, %v33_v17 }
  0x1a   :  { %225 = vmatpush3.bf16.msra.mxu0 %v241_v15  ;;  %v35_v20 = vsel %vm23_vm1, %v34_v19, 0.0 }
  0x1b   :  { %226 = vmatprep.subr.bf16.mxu0 %v269_v1  ;;  %v36_v21 = vrot.slane %v35_v20, 4 }
  0x1d   :  { %v37_v22 = vadd.f32 %v36_v21, %v35_v20 }
  0x1e   :  { %227 = vmatpush3.bf16.msra.mxu0 %v242_v18 }
  0x1f   :  { %v38_v23 = vrot.slane %v37_v22, 2 }
  0x21   :  { %v39_v24 = vadd.f32 %v38_v23, %v37_v22 }
  0x23   :  { %v40_v25 = vrot.slane %v39_v24, 1 }
  0x25   :  { %v41_v26 = vadd.f32 %v40_v25, %v39_v24 }
  0x27   :  { %v42_v27 = vmul.f32 0.5, %v41_v26 }
  0x29   :  { %v43_v28 = vadd.f32 1e-05, %v42_v27 }
  0x2b   :  { %243 = vrsqrt.f32 %v43_v28 }
  0x35   :  { %v244_v29 = vpop.eup %243 }
  0x36   :  { %v45_v31 = vmul.f32 %v244_v29, %v33_v17 }
  0x38   :  { %v53_v33 = vmul.f32 %v192_v30, %v45_v31 }
  0x3a   :  { %v61_v34 = vadd.f32 %v193_v32, %v53_v33 }
  0x3c   :  { %vm62_vm2 = vcmp.ge.f32.partialorder %v61_v34, 0.0  ;;  %v63_v35 = vmul.f32 0.01, %v61_v34 }
  0x3e   :  { %v64_v36 = vsel %vm62_vm2, %v61_v34, %v63_v35 }
  0x3f   :  { %v65_v37 = vpack.c.bf16 %v64_v36, %v64_v36 }
  0x41   :  { %229 = vmatmul.mubr.bf16.vlgmr.msra.gmra.mrb[0].mxu0 %v65_v37 }
 0x114   :  { %v171_v39 = vpop.f32.mrb[0].mxu0 }
 0x115   :  { %v172_v40 = vadd.f32 %v194_v38, %v171_v39  ;;  %v230_v41 = vpop.f32.mrb[1].mxu0 }
 0x116   :  { %v174_v42 = vpop.f32.mrb[2].mxu0 }
 0x117   :  { %177 = vst [vmem:[#allocation2] sm:$0x3] %v172_v40  ;;  %v231_v43 = vpop.f32.mrb[3].mxu0 }
 0x118   :  { %256 = shalt.err (!%p253_p4)
}
 0x119   :  { %s257_s4 = scalar_lea.hbm %s357_s5, 32 }
 0x11a   :  { %p258_p5 = scmp.ne.s32.totalorder %s357_s5, %s257_s4  ;;  %p261_p6 = scmp.lt.u32.totalorder %s257_s4, %s357_s5 }
 0x11c   :  { %p263_p7 = pnand %p261_p6, %p258_p5 }
 0x11e   :  { %266 = shalt.err (!%p263_p7)
}
 0x11f   :  { %187 = dma.vmem_to_hbm [thread:$0]  %s185_s16, 32, %s357_s5, [#allocation3]  }
 0x120   :  { %267 = dma.done.wait [#allocation3], 32  }
 0x121   :  { %268 = vsyncadd [#allocation3], 4294967264 }
 0x122   :  { %191 = vsyncpa [#allocation3], 1 }

// kernel: image_classifier_forward.2
= control target key start
LH: loop header
LB: loop body
LE: loop exit
PB: predicated region body
PF: predicated region fallthrough
CT: control target
= control target key end

     0   :  { %v4197_v0 = vmov 0.0   ;;  %vm4198_vm0 = vmmov 0   ;;  %vm134_vm1 = vcmask 261120   ;;  %vm1177_vm2 = vcmask 1042432   ;;  %s5074_s1 = inlined_call_operand.vmem [shape: bf16[32,128], index: 1, kind: input, shape index: {}]   ;;  %s5075_s0 = inlined_call_operand.vmem [shape: bf16[208,32], index: 0, kind: input, shape index: {}]   ;;  %s5076_s2 = inlined_call_operand.vmem [shape: bf16[9,128,128], index: 2, kind: input, shape index: {}]   ;;  %s5077_s4 = inlined_call_operand.vmem [shape: bf16[8,184], index: 4, kind: input, shape index: {}]   ;;  %s5078_s5 = inlined_call_operand.vmem [shape: bf16[128,128], index: 5, kind: input, shape index: {}]   ;;  %s5079_s3 = inlined_call_operand.vmem [shape: f32[1,128], index: 3, kind: input, shape index: {}]   ;;  %s5080_s6 = inlined_call_operand.vmem [shape: f32[1,128], index: 6, kind: input, shape index: {}]   ;;  %s5081_s7 = inlined_call_operand.vmem [shape: f32[2,128], index: 7, kind: output, shape index: {}]  }
   0x1   :  { %3498 = vmatprep.subr.bf16.mxu0 %v4197_v0  ;;  %v4097_v1 = vld [vmem:[%s5074_s1] sm:$0xff]   ;;  %3502 = vmatprep.mubr.msk.bf16.mxu0 %vm4198_vm0, %v4197_v0  ;;  %v4098_v2 = vld [vmem:[%s5074_s1 + $0x8] sm:$0xff]   ;;  %v4101_v5 = vld [vmem:[%s5075_s0 + $0x10] sm:$0xff]   ;;  %vm409_vm3 = vsmask.f32 7424  ;;  %vm1780_vm6 = vcmask 1041408  }
   0x2   :  { %3499 = vmatpush3.bf16.msra.mxu0 %v4097_v1  ;;  %v4099_v3 = vld [vmem:[%s5075_s0] sm:$0xff]   ;;  %v4100_v4 = vld [vmem:[%s5075_s0 + $0x8] sm:$0xff]   ;;  %v4102_v6 = vld [vmem:[%s5075_s0 + $0x18] sm:$0xff]   ;;  %vm1432_vm4 = vsmask.f32 2304  ;;  %vm2038_vm7 = vcmask 1045504  }
   0x3   :  { %3500 = vmatprep.subr.bf16.mxu0 %v4197_v0  ;;  %v4103_v7 = vld [vmem:[%s5075_s0 + $0x20] sm:$0xff]   ;;  %v4104_v8 = vld [vmem:[%s5075_s0 + $0x28] sm:$0xff]   ;;  %v4105_v9 = vld [vmem:[%s5075_s0 + $0x30] sm:$0xff]   ;;  %vm2291_vm5 = vsmask.f32 5376  ;;  %vm2580_vm8 = vcmask 1044480  }
   0x4   :  { %v4106_v10 = vld [vmem:[%s5075_s0 + $0x38] sm:$0xff]   ;;  %v4107_v11 = vld [vmem:[%s5075_s0 + $0x40] sm:$0xff]   ;;  %v4108_v12 = vld [vmem:[%s5075_s0 + $0x48] sm:$0xff]   ;;  %vm899_vm9 = vcmask 1046528   ;;  %vm2887_vm10 = vcmask 457728   ;;  %vm2891_vm11 = vcmask 1043456  }
   0x5   :  { %v4109_v13 = vld [vmem:[%s5075_s0 + $0x50] sm:$0xff]   ;;  %v4112_v14 = vld [vmem:[%s5076_s2 + $0xc0] sm:$0xff]   ;;  %v4114_v16 = vld [vmem:[%s5076_s2 + $0xc8] sm:$0xff]  }
   0x6   :  { %3501 = vmatpush3.bf16.msra.mxu0 %v4098_v2  ;;  %3674 = vmatprep.subr.bf16.mxu1 %v4112_v14  ;;  %v4113_v15 = vld [vmem:[%s5076_s2 + $0x40] sm:$0xff]   ;;  %v4115_v17 = vld [vmem:[%s5076_s2 + $0x48] sm:$0xff]   ;;  %v4110_v18 = vld [vmem:[%s5075_s0 + $0x58] sm:$0xff]  }
   0x7   :  { %3675 = vmatpush3.bf16.msra.mxu1 %v4112_v14  ;;  %3554 = vmatprep.subr.bf16.mxu0 %v4113_v15  ;;  %v4116_v19 = vld [vmem:[%s5076_s2 + $0xd0] sm:$0xff]   ;;  %v4118_v21 = vld [vmem:[%s5076_s2 + $0xd8] sm:$0xff]   ;;  %v4111_v23 = vld [vmem:[%s5075_s0 + $0x60] sm:$0xff]  }
   0x8   :  { %3676 = vmatprep.subr.bf16.mxu1 %v4114_v16  ;;  %v4117_v20 = vld [vmem:[%s5076_s2 + $0x50] sm:$0xff]   ;;  %v4119_v22 = vld [vmem:[%s5076_s2 + $0x58] sm:$0xff]   ;;  %v4120_v24 = vld [vmem:[%s5076_s2 + $0xe0] sm:$0xff]  }
   0x9   :  { %3503 = vmatmul.mubr.msk.bf16.vlgmr.msra.gmra.mrb[0].mxu0 %vm134_vm1, %v4099_v3  ;;  %v4121_v25 = vld [vmem:[%s5076_s2 + $0x60] sm:$0xff]   ;;  %v4122_v26 = vld [vmem:[%s5076_s2 + $0xe8] sm:$0xff]   ;;  %v4124_v28 = vld [vmem:[%s5076_s2 + $0xf0] sm:$0xff]  }
   0xa   :  { %3506 = vmatprep.mubr.msk.bf16.mxu0 %vm4198_vm0, %v4197_v0  ;;  %3555 = vmatpush3.bf16.msra.mxu0 %v4113_v15  ;;  %v4123_v27 = vld [vmem:[%s5076_s2 + $0x68] sm:$0xff]   ;;  %v4125_v29 = vld [vmem:[%s5076_s2 + $0x70] sm:$0xff]   ;;  %v4126_v30 = vld [vmem:[%s5076_s2 + $0xf8] sm:$0xff]  }
   0xb   :  { %3677 = vmatpush3.bf16.msra.mxu1 %v4114_v16  ;;  %3556 = vmatprep.subr.bf16.mxu0 %v4115_v17  ;;  %v4127_v31 = vld [vmem:[%s5076_s2 + $0x78] sm:$0xff]   ;;  %v4377_v32 = vld [vmem:[%s5076_s2 + $0x100] sm:$0xff]  }
   0xc   :  { %3678 = vmatprep.subr.bf16.mxu1 %v4116_v19  ;;  %v4383_v33 = vld [vmem:[%s5076_s2] sm:$0xff]  }
   0xe   :  { %3557 = vmatpush3.bf16.msra.mxu0 %v4115_v17  ;;  %v4129_v17 = vld [vmem:[%s5076_s2 + $0x108] sm:$0xff]  }
   0xf   :  { %3679 = vmatpush3.bf16.msra.mxu1 %v4116_v19  ;;  %3558 = vmatprep.subr.bf16.mxu0 %v4117_v20 }
  0x10   :  { %3680 = vmatprep.subr.bf16.mxu1 %v4118_v21 }
  0x11   :  { %3507 = vmatmul.mubr.msk.bf16.gmra.mrb[4].mxu0 %vm134_vm1, %v4100_v4 }
  0x12   :  { %3510 = vmatprep.mubr.msk.bf16.mxu0 %vm4198_vm0, %v4197_v0  ;;  %3559 = vmatpush3.bf16.msra.mxu0 %v4117_v20 }
  0x13   :  { %3681 = vmatpush3.bf16.msra.mxu1 %v4118_v21  ;;  %3560 = vmatprep.subr.bf16.mxu0 %v4119_v22 }
  0x14   :  { %3682 = vmatprep.subr.bf16.mxu1 %v4120_v24 }
  0x16   :  { %3561 = vmatpush3.bf16.msra.mxu0 %v4119_v22 }
  0x17   :  { %3683 = vmatpush3.bf16.msra.mxu1 %v4120_v24  ;;  %3562 = vmatprep.subr.bf16.mxu0 %v4121_v25  ;;  %v4132_v24 = vld [vmem:[%s5076_s2 + $0x8] sm:$0xff]  }
  0x18   :  { %3684 = vmatprep.subr.bf16.mxu1 %v4122_v26 }
  0x19   :  { %3511 = vmatmul.mubr.msk.bf16.gmra.mrb[8].mxu0 %vm134_vm1, %v4101_v5 }
  0x1a   :  { %3514 = vmatprep.mubr.msk.bf16.mxu0 %vm4198_vm0, %v4197_v0  ;;  %3563 = vmatpush3.bf16.msra.mxu0 %v4121_v25 }
  0x1b   :  { %3685 = vmatpush3.bf16.msra.mxu1 %v4122_v26  ;;  %3564 = vmatprep.subr.bf16.mxu0 %v4123_v27 }
  0x1c   :  { %3686 = vmatprep.subr.bf16.mxu1 %v4124_v28 }
  0x1e   :  { %3565 = vmatpush3.bf16.msra.mxu0 %v4123_v27 }
  0x1f   :  { %3687 = vmatpush3.bf16.msra.mxu1 %v4124_v28  ;;  %3566 = vmatprep.subr.bf16.mxu0 %v4125_v29 }
  0x20   :  { %3688 = vmatprep.subr.bf16.mxu1 %v4126_v30 }
  0x21   :  { %3515 = vmatmul.mubr.msk.bf16.gmra.mrb[12].mxu0 %vm134_vm1, %v4102_v6 }
  0x22   :  { %3518 = vmatprep.mubr.msk.bf16.mxu0 %vm4198_vm0, %v4197_v0  ;;  %3567 = vmatpush3.bf16.msra.mxu0 %v4125_v29 }
  0x23   :  { %3689 = vmatpush3.bf16.msra.mxu1 %v4126_v30  ;;  %3568 = vmatprep.subr.bf16.mxu0 %v4127_v31  ;;  %v4131_v30 = vld [vmem:[%s5076_s2 + $0x110] sm:$0xff]  }
  0x24   :  { %3714 = vmatprep.subr.bf16.mxu1 %v4377_v32 }
  0x26   :  { %3569 = vmatpush3.bf16.msra.mxu0 %v4127_v31 }
  0x27   :  { %3594 = vmatprep.subr.bf16.mxu0 %v4383_v33 }
  0x29   :  { %3519 = vmatmul.mubr.msk.bf16.gmra.mrb[16].mxu0 %vm134_vm1, %v4103_v7 }
  0x2a   :  { %3522 = vmatprep.mubr.msk.bf16.mxu0 %vm4198_vm0, %v4197_v0 }
  0x31   :  { %3523 = vmatmul.mubr.msk.bf16.gmra.mrb[20].mxu0 %vm134_vm1, %v4104_v8 }
  0x32   :  { %3526 = vmatprep.mubr.msk.bf16.mxu0 %vm4198_vm0, %v4197_v0 }
  0x39   :  { %3527 = vmatmul.mubr.msk.bf16.gmra.mrb[24].mxu0 %vm134_vm1, %v4105_v9 }
  0x3a   :  { %3530 = vmatprep.mubr.msk.bf16.mxu0 %vm4198_vm0, %v4197_v0 }
  0x41   :  { %3531 = vmatmul.mubr.msk.bf16.gmra.mrb[28].mxu0 %vm134_vm1, %v4106_v10 }
  0x42   :  { %3534 = vmatprep.mubr.msk.bf16.mxu0 %vm4198_vm0, %v4197_v0 }
  0x49   :  { %3535 = vmatmul.mubr.msk.bf16.gmra.mrb[32].mxu0 %vm134_vm1, %v4107_v11 }
  0x4a   :  { %3538 = vmatprep.mubr.msk.bf16.mxu0 %vm4198_vm0, %v4197_v0 }
  0x51   :  { %3539 = vmatmul.mubr.msk.bf16.gmra.mrb[36].mxu0 %vm134_vm1, %v4108_v12 }
  0x52   :  { %3542 = vmatprep.mubr.msk.bf16.mxu0 %vm4198_vm0, %v4197_v0 }
  0x59   :  { %3543 = vmatmul.mubr.msk.bf16.gmra.mrb[40].mxu0 %vm134_vm1, %v4109_v13 }
  0x5a   :  { %3546 = vmatprep.mubr.msk.bf16.mxu0 %vm4198_vm0, %v4197_v0 }
  0x61   :  { %3547 = vmatmul.mubr.msk.bf16.gmra.mrb[44].mxu0 %vm134_vm1, %v4110_v18 }
  0x62   :  { %3550 = vmatprep.mubr.msk.bf16.mxu0 %vm4198_vm0, %v4197_v0 }
  0x69   :  { %3551 = vmatmul.mubr.msk.bf16.gmra.mrb[48].mxu0 %vm134_vm1, %v4111_v23 }
  0xdc   :  { %v208_v34 = vpop.f32.mrb[0].mxu0 }
  0xdd   :  { %v3504_v35 = vpop.f32.mrb[1].mxu0  ;;  %v311_v37 = vmax.f32 %v208_v34, 0.0 }
  0xde   :  { %v211_v36 = vpop.f32.mrb[2].mxu0 }
  0xdf   :  { %v312_v38 = vmax.f32 %v211_v36, 0.0  ;;  %v3505_v39 = vpop.f32.mrb[3].mxu0 }
  0xe1   :  { %v4386_v40 = vpack.c.bf16 %v312_v38, %v311_v37  ;;  %v4134_v37 = vld [vmem:[%s5076_s2 + $0x10] sm:$0xff]  }
  0xe3   :  { %350 = vst [vmem:[#allocation2] sm:$0xff] %v4386_v40  ;;  %v413_v43 = vshll.u32 %v4386_v40, 16  ;;  %v411_v51 = vshrl.u32 %v4386_v40, 16 }
  0xe4   :  { %v216_v41 = vpop.f32.mrb[4].mxu0 }
  0xe5   :  { %v3508_v42 = vpop.f32.mrb[5].mxu0  ;;  %v313_v45 = vmax.f32 %v216_v41, 0.0  ;;  %v415_v49 = vrot.slane %v413_v43, 1  ;;  %v4133_v43 = vld [vmem:[%s5076_s2 + $0x118] sm:$0xff]  }
  0xe6   :  { %v219_v44 = vpop.f32.mrb[6].mxu0 }
  0xe7   :  { %v314_v46 = vmax.f32 %v219_v44, 0.0  ;;  %v3509_v47 = vpop.f32.mrb[7].mxu0  ;;  %v416_v61 = vor.u32 %v415_v49, %v411_v51  ;;  %v4135_v51 = vld [vmem:[%s5076_s2 + $0x18] sm:$0xff]  }
  0xe9   :  { %v4390_v48 = vpack.c.bf16 %v314_v46, %v313_v45 }
  0xea   :  { %v1134_v50 = vld [vmem:[#allocation2] sm:$0xe0] }
  0xeb   :  { %351 = vst [vmem:[#allocation2 + $0x8] sm:$0xff] %v4390_v48  ;;  %v1178_v52 = vrot.slane %v1134_v50, 5  ;;  %v1179_v53 = vrot.slane %v4390_v48, 5  ;;  %v418_v54 = vshll.u32 %v4390_v48, 16  ;;  %v422_v55 = vshrl.u32 %v4390_v48, 16 }
  0xec   :  { %v224_v56 = vpop.f32.mrb[8].mxu0  ;;  %v1434_v57 = vshrl.u32 %v1134_v50, 16  ;;  %v1437_v58 = vshll.u32 %v1134_v50, 16 }
  0xed   :  { %v3512_v59 = vpop.f32.mrb[9].mxu0  ;;  %v1180_v60 = vsel %vm1177_vm2, %v1178_v52, %v1179_v53  ;;  %v420_v62 = vrot.slane %v418_v54, 1  ;;  %v1444_v63 = vrot.slane %v422_v55, 5  ;;  %v1447_v4 = vrot.slane %v418_v54, 6 }
  0xee   :  { %v227_v1 = vpop.f32.mrb[10].mxu0  ;;  %3690 = vmatprep.mubr.bf16.mxu1 %v1180_v60  ;;  %v1436_v2 = vrot.slane %v1434_v57, 5  ;;  %v1439_v3 = vrot.slane %v1437_v58, 6  ;;  %v315_v5 = vmax.f32 %v224_v56, 0.0  ;;  %v4136_v57 = vld [vmem:[%s5076_s2 + $0x120] sm:$0xff]  }
  0xef   :  { %v316_v6 = vmax.f32 %v227_v1, 0.0  ;;  %v3513_v7 = vpop.f32.mrb[11].mxu0  ;;  %v421_v8 = vsel %vm409_vm3, %v416_v61, %v420_v62  ;;  %v1448_v10 = vor.u32 %v1447_v4, %v1444_v63  ;;  %v424_v19 = vor.u32 %v422_v55, %v420_v62  ;;  %v4137_v62 = vld [vmem:[%s5076_s2 + $0x20] sm:$0xff]  }
  0xf0   :  { %3570 = vmatprep.mubr.bf16.mxu0 %v421_v8  ;;  %v1440_v9 = vor.u32 %v1439_v3, %v1436_v2 }
  0xf1   :  { %v4399_v11 = vpack.c.bf16 %v316_v6, %v315_v5  ;;  %v4138_v6 = vld [vmem:[%s5076_s2 + $0x128] sm:$0xff]  }
  0xf2   :  { %v4402_v12 = vsel %vm1432_vm4, %v1440_v9, %v1448_v10 }
  0xf3   :  { %352 = vst [vmem:[#allocation2 + $0x10] sm:$0xff] %v4399_v11  ;;  %v1181_v13 = vrot.slane %v4399_v11, 5  ;;  %v426_v14 = vshll.u32 %v4399_v11, 16  ;;  %v430_v15 = vshrl.u32 %v4399_v11, 16 }
  0xf4   :  { %v232_v16 = vpop.f32.mrb[12].mxu0 }
  0xf5   :  { %v3516_v18 = vpop.f32.mrb[13].mxu0  ;;  %v1182_v20 = vsel %vm1177_vm2, %v1179_v53, %v1181_v13  ;;  %v428_v21 = vrot.slane %v426_v14, 1  ;;  %v1453_v22 = vrot.slane %v430_v15, 5  ;;  %v1456_v25 = vrot.slane %v426_v14, 6 }
  0xf6   :  { %v235_v23 = vpop.f32.mrb[14].mxu0  ;;  %3691 = vmatmul.mubr.bf16.vlgmr.msra.gmra.mrb[0].mxu1 %v1182_v20  ;;  %v317_v26 = vmax.f32 %v232_v16, 0.0  ;;  %v2300_v34 = vrot.slane %v430_v15, 2  ;;  %v2301_v35 = vrot.slane %v426_v14, 3  ;;  %v4139_v16 = vld [vmem:[%s5076_s2 + $0x28] sm:$0xff]  }
  0xf7   :  { %v318_v27 = vmax.f32 %v235_v23, 0.0  ;;  %v3517_v28 = vpop.f32.mrb[15].mxu0  ;;  %v429_v29 = vsel %vm409_vm3, %v424_v19, %v428_v21  ;;  %3715 = vmatpush3.bf16.msra.mxu1 %v4377_v32  ;;  %v1457_v31 = vor.u32 %v1456_v25, %v1453_v22  ;;  %v432_v46 = vor.u32 %v430_v15, %v428_v21  ;;  %v4141_v23 = vld [vmem:[%s5076_s2 + $0x130] sm:$0xff]  }
  0xf8   :  { %3571 = vmatmul.mubr.bf16.vlgmr.msra.gmra.mrb[52].mxu0 %v429_v29  ;;  %3716 = vmatprep.subr.bf16.mxu1 %v4129_v17  ;;  %v4429_v38 = vor.u32 %v2301_v35, %v2300_v34 }
  0xf9   :  { %v4420_v36 = vpack.c.bf16 %v318_v27, %v317_v26  ;;  %3595 = vmatpush3.bf16.msra.mxu0 %v4383_v33  ;;  %v4427_v32 = vsel %vm1432_vm4, %v1448_v10, %v1457_v31  ;;  %v4140_v27 = vld [vmem:[%s5076_s2 + $0x30] sm:$0xff]  }
  0xfa   :  { %3596 = vmatprep.subr.bf16.mxu0 %v4132_v24 }
  0xfb   :  { %353 = vst [vmem:[#allocation2 + $0x18] sm:$0xff] %v4420_v36  ;;  %v1183_v39 = vrot.slane %v4420_v36, 5  ;;  %v434_v41 = vshll.u32 %v4420_v36, 16  ;;  %v438_v42 = vshrl.u32 %v4420_v36, 16  ;;  %3717 = vmatpush3.bf16.msra.mxu1 %v4129_v17 }
  0xfc   :  { %v240_v33 = vpop.f32.mrb[16].mxu0  ;;  %3718 = vmatprep.subr.bf16.mxu1 %v4131_v30 }
  0xfd   :  { %v3520_v44 = vpop.f32.mrb[17].mxu0  ;;  %v1184_v45 = vsel %vm1177_vm2, %v1181_v13, %v1183_v39  ;;  %v436_v47 = vrot.slane %v434_v41, 1  ;;  %3597 = vmatpush3.bf16.msra.mxu0 %v4132_v24  ;;  %v1462_v49 = vrot.slane %v438_v42, 5  ;;  %v1465_v52 = vrot.slane %v434_v41, 6 }
  0xfe   :  { %v243_v50 = vpop.f32.mrb[18].mxu0  ;;  %3694 = vmatprep.mubr.bf16.mxu1 %v1184_v45  ;;  %3598 = vmatprep.subr.bf16.mxu0 %v4134_v37  ;;  %v319_v53 = vmax.f32 %v240_v33, 0.0  ;;  %v2304_v59 = vrot.slane %v438_v42, 2  ;;  %v2305_v60 = vrot.slane %v434_v41, 3 }
  0xff   :  { %v320_v54 = vmax.f32 %v243_v50, 0.0  ;;  %v3521_v55 = vpop.f32.mrb[19].mxu0  ;;  %v437_v56 = vsel %vm409_vm3, %v432_v46, %v436_v47  ;;  %3719 = vmatpush3.bf16.msra.mxu1 %v4131_v30  ;;  %v1466_v58 = vor.u32 %v1465_v52, %v1462_v49  ;;  %v440_v10 = vor.u32 %v438_v42, %v436_v47  ;;  %v4142_v46 = vld [vmem:[%s5076_s2 + $0x38] sm:$0xff]  }
 0x100   :  { %3574 = vmatprep.mubr.bf16.mxu0 %v437_v56  ;;  %3720 = vmatprep.subr.bf16.mxu1 %v4133_v43  ;;  %v2306_v1 = vor.u32 %v2305_v60, %v2304_v59  ;;  %v4508_v59 = vld [vmem:[%s5076_s2 + $0x80] sm:$0xff]  }
 0x101   :  { %v4446_v61 = vpack.c.bf16 %v320_v54, %v319_v53  ;;  %3599 = vmatpush3.bf16.msra.mxu0 %v4134_v37  ;;  %v4452_v63 = vsel %vm1432_vm4, %v1457_v31, %v1466_v58  ;;  %v4143_v37 = vld [vmem:[%s5076_s2 + $0x138] sm:$0xff]   ;;  %v4498_v54 = vld [vmem:[%s5076_s2 + $0x140] sm:$0xff]  }
 0x102   :  { %3600 = vmatprep.subr.bf16.mxu0 %v4135_v51  ;;  %v4463_v7 = vsel %vm2291_vm5, %v4429_v38, %v2306_v1 }
 0x103   :  { %354 = vst [vmem:[#allocation2 + $0x20] sm:$0xff] %v4446_v61  ;;  %v1185_v2 = vrot.slane %v4446_v61, 5  ;;  %v442_v3 = vshll.u32 %v4446_v61, 16  ;;  %v446_v4 = vshrl.u32 %v4446_v61, 16  ;;  %3721 = vmatpush3.bf16.msra.mxu1 %v4133_v43 }
 0x104   :  { %v248_v5 = vpop.f32.mrb[20].mxu0  ;;  %3722 = vmatprep.subr.bf16.mxu1 %v4136_v57 }
 0x105   :  { %v3524_v8 = vpop.f32.mrb[21].mxu0  ;;  %v1186_v9 = vsel %vm1177_vm2, %v1183_v39, %v1185_v2  ;;  %v444_v13 = vrot.slane %v442_v3, 1  ;;  %3601 = vmatpush3.bf16.msra.mxu0 %v4135_v51  ;;  %v1471_v14 = vrot.slane %v446_v4, 5  ;;  %v1474_v17 = vrot.slane %v442_v3, 6 }
 0x106   :  { %v251_v15 = vpop.f32.mrb[22].mxu0  ;;  %3695 = vmatmul.mubr.bf16.gmra.mrb[4].mxu1 %v1186_v9  ;;  %3602 = vmatprep.subr.bf16.mxu0 %v4137_v62  ;;  %v321_v18 = vmax.f32 %v248_v5, 0.0  ;;  %v2308_v22 = vrot.slane %v446_v4, 2  ;;  %v2309_v25 = vrot.slane %v442_v3, 3 }
 0x107   :  { %v322_v19 = vmax.f32 %v251_v15, 0.0  ;;  %v3525_v20 = vpop.f32.mrb[23].mxu0  ;;  %v445_v21 = vsel %vm409_vm3, %v440_v10, %v444_v13  ;;  %3723 = vmatpush3.bf16.msra.mxu1 %v4136_v57  ;;  %v1475_v24 = vor.u32 %v1474_v17, %v1471_v14  ;;  %v448_v33 = vor.u32 %v446_v4, %v444_v13 }
 0x108   :  { %3575 = vmatmul.mubr.bf16.gmra.mrb[56].mxu0 %v445_v21  ;;  %3724 = vmatprep.subr.bf16.mxu1 %v4138_v6  ;;  %v2310_v29 = vor.u32 %v2309_v25, %v2308_v22 }
 0x109   :  { %v4473_v26 = vpack.c.bf16 %v322_v19, %v321_v18  ;;  %3603 = vmatpush3.bf16.msra.mxu0 %v4137_v62  ;;  %v4479_v28 = vsel %vm1432_vm4, %v1466_v58, %v1475_v24 }
 0x10a   :  { %3604 = vmatprep.subr.bf16.mxu0 %v4139_v16  ;;  %v4488_v39 = vsel %vm2291_vm5, %v2306_v1, %v2310_v29 }
 0x10b   :  { %v1187_v30 = vrot.slane %v4473_v26, 5  ;;  %v450_v31 = vshll.u32 %v4473_v26, 16  ;;  %v454_v34 = vshrl.u32 %v4473_v26, 16  ;;  %3725 = vmatpush3.bf16.msra.mxu1 %v4138_v6 }
 0x10c   :  { %v256_v35 = vpop.f32.mrb[24].mxu0  ;;  %3726 = vmatprep.subr.bf16.mxu1 %v4141_v23 }
 0x10d   :  { %v3528_v41 = vpop.f32.mrb[25].mxu0  ;;  %v1188_v42 = vsel %vm1177_vm2, %v1185_v2, %v1187_v30  ;;  %v452_v43 = vrot.slane %v450_v31, 1  ;;  %3605 = vmatpush3.bf16.msra.mxu0 %v4139_v16  ;;  %v1480_v44 = vrot.slane %v454_v34, 5  ;;  %v1483_v47 = vrot.slane %v450_v31, 6 }
 0x10e   :  { %v259_v45 = vpop.f32.mrb[26].mxu0  ;;  %3698 = vmatprep.mubr.bf16.mxu1 %v1188_v42  ;;  %3606 = vmatprep.subr.bf16.mxu0 %v4140_v27  ;;  %v323_v49 = vmax.f32 %v256_v35, 0.0  ;;  %v2312_v53 = vrot.slane %v454_v34, 2  ;;  %v2313_v56 = vrot.slane %v450_v31, 3 }
 0x10f   :  { %v324_v50 = vmax.f32 %v259_v45, 0.0  ;;  %v3529_v51 = vpop.f32.mrb[27].mxu0  ;;  %v453_v52 = vsel %vm409_vm3, %v448_v33, %v452_v43  ;;  %3727 = vmatpush3.bf16.msra.mxu1 %v4141_v23  ;;  %v1484_v55 = vor.u32 %v1483_v47, %v1480_v44  ;;  %v456_v8 = vor.u32 %v454_v34, %v452_v43 }
 0x110   :  { %3578 = vmatprep.mubr.bf16.mxu0 %v453_v52  ;;  %3728 = vmatprep.subr.bf16.mxu1 %v4143_v37  ;;  %v2314_v60 = vor.u32 %v2313_v56, %v2312_v53 }
 0x111   :  { %v4500_v57 = vpack.c.bf16 %v324_v50, %v323_v49  ;;  %3607 = vmatpush3.bf16.msra.mxu0 %v4140_v27  ;;  %v4503_v58 = vsel %vm1432_vm4, %v1475_v24, %v1484_v55 }
 0x112   :  { %3608 = vmatprep.subr.bf16.mxu0 %v4142_v46  ;;  %v4515_v4 = vsel %vm2291_vm5, %v2310_v29, %v2314_v60 }
 0x113   :  { %v1189_v62 = vrot.slane %v4500_v57, 5  ;;  %v458_v1 = vshll.u32 %v4500_v57, 16  ;;  %v462_v2 = vshrl.u32 %v4500_v57, 16  ;;  %3729 = vmatpush3.bf16.msra.mxu1 %v4143_v37 }
 0x114   :  { %v264_v3 = vpop.f32.mrb[28].mxu0  ;;  %3754 = vmatprep.subr.bf16.mxu1 %v4498_v54 }
 0x115   :  { %v3532_v5 = vpop.f32.mrb[29].mxu0  ;;  %v1190_v6 = vsel %vm1177_vm2, %v1187_v30, %v1189_v62  ;;  %v460_v9 = vrot.slane %v458_v1, 1  ;;  %3609 = vmatpush3.bf16.msra.mxu0 %v4142_v46  ;;  %v1489_v10 = vrot.slane %v462_v2, 5  ;;  %v1492_v14 = vrot.slane %v458_v1, 6 }
 0x116   :  { %v267_v13 = vpop.f32.mrb[30].mxu0  ;;  %3699 = vmatmul.mubr.bf16.gmra.mrb[8].mxu1 %v1190_v6  ;;  %3634 = vmatprep.subr.bf16.mxu0 %v4508_v59  ;;  %v325_v15 = vmax.f32 %v264_v3, 0.0  ;;  %v2316_v19 = vrot.slane %v462_v2, 2  ;;  %v2317_v21 = vrot.slane %v458_v1, 3 }
 0x117   :  { %v326_v16 = vmax.f32 %v267_v13, 0.0  ;;  %v3533_v17 = vpop.f32.mrb[31].mxu0  ;;  %v461_v18 = vsel %vm409_vm3, %v456_v8, %v460_v9  ;;  %v1493_v20 = vor.u32 %v1492_v14, %v1489_v10  ;;  %v464_v37 = vor.u32 %v462_v2, %v460_v9 }
 0x118   :  { %3579 = vmatmul.mubr.bf16.gmra.mrb[60].mxu0 %v461_v18  ;;  %v2318_v24 = vor.u32 %v2317_v21, %v2316_v19 }
 0x119   :  { %v4520_v22 = vpack.c.bf16 %v326_v16, %v325_v15  ;;  %v4523_v23 = vsel %vm1432_vm4, %v1484_v55, %v1493_v20 }
 0x11a   :  { %v4529_v31 = vsel %vm2291_vm5, %v2314_v60, %v2318_v24 }
 0x11b   :  { %v1191_v25 = vrot.slane %v4520_v22, 5  ;;  %v466_v27 = vshll.u32 %v4520_v22, 16  ;;  %v470_v29 = vshrl.u32 %v4520_v22, 16 }
 0x11c   :  { %v272_v30 = vpop.f32.mrb[32].mxu0 }
 0x11d   :  { %v3536_v34 = vpop.f32.mrb[33].mxu0  ;;  %v1192_v35 = vsel %vm1177_vm2, %v1189_v62, %v1191_v25  ;;  %v468_v41 = vrot.slane %v466_v27, 1  ;;  %v1498_v42 = vrot.slane %v470_v29, 5  ;;  %v1501_v43 = vrot.slane %v466_v27, 6 }
 0x11e   :  { %v275_v33 = vpop.f32.mrb[34].mxu0  ;;  %3702 = vmatprep.mubr.bf16.mxu1 %v1192_v35  ;;  %v327_v44 = vmax.f32 %v272_v30, 0.0  ;;  %v2320_v49 = vrot.slane %v470_v29, 2  ;;  %v2321_v51 = vrot.slane %v466_v27, 3 }
 0x11f   :  { %v328_v45 = vmax.f32 %v275_v33, 0.0  ;;  %v3537_v46 = vpop.f32.mrb[35].mxu0  ;;  %v469_v47 = vsel %vm409_vm3, %v464_v37, %v468_v41  ;;  %v1502_v50 = vor.u32 %v1501_v43, %v1498_v42  ;;  %v472_v6 = vor.u32 %v470_v29, %v468_v41 }
 0x120   :  { %3582 = vmatprep.mubr.bf16.mxu0 %v469_v47  ;;  %v2322_v55 = vor.u32 %v2321_v51, %v2320_v49 }
 0x121   :  { %v4533_v52 = vpack.c.bf16 %v328_v45, %v327_v44  ;;  %v4536_v53 = vsel %vm1432_vm4, %v1493_v20, %v1502_v50 }
 0x122   :  { %v4542_v2 = vsel %vm2291_vm5, %v2318_v24, %v2322_v55 }
 0x123   :  { %v1193_v56 = vrot.slane %v4533_v52, 5  ;;  %v474_v60 = vshll.u32 %v4533_v52, 16  ;;  %v478_v62 = vshrl.u32 %v4533_v52, 16 }
 0x124   :  { %v280_v1 = vpop.f32.mrb[36].mxu0 }
 0x125   :  { %v3540_v3 = vpop.f32.mrb[37].mxu0  ;;  %v1194_v5 = vsel %vm1177_vm2, %v1191_v25, %v1193_v56  ;;  %v476_v8 = vrot.slane %v474_v60, 1  ;;  %v1507_v9 = vrot.slane %v478_v62, 5  ;;  %v1510_v13 = vrot.slane %v474_v60, 6 }
 0x126   :  { %v283_v10 = vpop.f32.mrb[38].mxu0  ;;  %3703 = vmatmul.mubr.bf16.gmra.mrb[12].mxu1 %v1194_v5  ;;  %v329_v14 = vmax.f32 %v280_v1, 0.0  ;;  %v2324_v18 = vrot.slane %v478_v62, 2  ;;  %v2325_v20 = vrot.slane %v474_v60, 3 }
 0x127   :  { %v330_v15 = vmax.f32 %v283_v10, 0.0  ;;  %v3541_v16 = vpop.f32.mrb[39].mxu0  ;;  %v477_v17 = vsel %vm409_vm3, %v472_v6, %v476_v8  ;;  %v4546_v19 = vor.u32 %v1510_v13, %v1507_v9  ;;  %v480_v42 = vor.u32 %v478_v62, %v476_v8 }
 0x128   :  { %3583 = vmatmul.mubr.bf16.gmra.mrb[64].mxu0 %v477_v17  ;;  %v2326_v25 = vor.u32 %v2325_v20, %v2324_v18 }
 0x129   :  { %v4548_v21 = vpack.c.bf16 %v330_v15, %v329_v14  ;;  %v4552_v24 = vsel %vm1432_vm4, %v1502_v50, %v4546_v19 }
 0x12a   :  { %v4562_v35 = vsel %vm2291_vm5, %v2322_v55, %v2326_v25 }
 0x12b   :  { %v1195_v27 = vrot.slane %v4548_v21, 5  ;;  %v4556_v29 = vshll.u32 %v4548_v21, 16  ;;  %v4559_v30 = vshrl.u32 %v4548_v21, 16 }
 0x12c   :  { %v288_v34 = vpop.f32.mrb[40].mxu0 }
 0x12d   :  { %v3544_v37 = vpop.f32.mrb[41].mxu0  ;;  %v1196_v41 = vsel %vm1177_vm2, %v1193_v56, %v1195_v27  ;;  %v484_v33 = vrot.slane %v4556_v29, 1  ;;  %v331_v44 = vmax.f32 %v288_v34, 0.0  ;;  %v2328_v49 = vrot.slane %v4559_v30, 2 }
 0x12e   :  { %v291_v43 = vpop.f32.mrb[42].mxu0  ;;  %3706 = vmatprep.mubr.bf16.mxu1 %v1196_v41  ;;  %v2329_v50 = vrot.slane %v4556_v29, 3 }
 0x12f   :  { %v332_v45 = vmax.f32 %v291_v43, 0.0  ;;  %v3545_v46 = vpop.f32.mrb[43].mxu0  ;;  %v485_v47 = vsel %vm409_vm3, %v480_v42, %v484_v33  ;;  %v488_v8 = vor.u32 %v4559_v30, %v484_v33 }
 0x130   :  { %3586 = vmatprep.mubr.bf16.mxu0 %v485_v47  ;;  %v2330_v55 = vor.u32 %v2329_v50, %v2328_v49 }
 0x131   :  { %v4569_v51 = vpack.c.bf16 %v332_v45, %v331_v44 }
 0x132   :  { %v4577_v3 = vsel %vm2291_vm5, %v2326_v25, %v2330_v55 }
 0x133   :  { %v1197_v56 = vrot.slane %v4569_v51, 5  ;;  %v4573_v60 = vshll.u32 %v4569_v51, 16  ;;  %v494_v62 = vshrl.u32 %v4569_v51, 16  ;;  %v1800_v34 = vrot.slane %v4569_v51, 6 }
 0x134   :  { %v296_v1 = vpop.f32.mrb[44].mxu0  ;;  %v2056_v37 = vrot.slane %v4569_v51, 2  ;;  %v2598_v49 = vrot.slane %v4569_v51, 3 }
 0x135   :  { %v3548_v5 = vpop.f32.mrb[45].mxu0  ;;  %v1198_v6 = vsel %vm1177_vm2, %v1195_v27, %v1197_v56  ;;  %v492_v9 = vrot.slane %v4573_v60, 1  ;;  %v333_v13 = vmax.f32 %v296_v1, 0.0  ;;  %v2332_v17 = vrot.slane %v494_v62, 2 }
 0x136   :  { %v299_v10 = vpop.f32.mrb[46].mxu0  ;;  %3707 = vmatmul.mubr.bf16.gmra.mrb[16].mxu1 %v1198_v6  ;;  %v2333_v18 = vrot.slane %v4573_v60, 3  ;;  %v1525_v25 = vrot.slane %v494_v62, 5  ;;  %v1528_v27 = vrot.slane %v4573_v60, 6 }
 0x137   :  { %v334_v14 = vmax.f32 %v299_v10, 0.0  ;;  %v3549_v15 = vpop.f32.mrb[47].mxu0  ;;  %v493_v16 = vsel %vm409_vm3, %v488_v8, %v492_v9 }
 0x138   :  { %3587 = vmatmul.mubr.bf16.gmra.mrb[68].mxu0 %v493_v16  ;;  %v2334_v41 = vor.u32 %v2333_v18, %v2332_v17  ;;  %v4601_v5 = vor.u32 %v1528_v27, %v1525_v25 }
 0x139   :  { %v4584_v20 = vpack.c.bf16 %v334_v14, %v333_v13 }
 0x13a   :  { %v4596_v47 = vsel %vm2291_vm5, %v2330_v55, %v2334_v41 }
 0x13b   :  { %361 = vst [vmem:[#allocation2 + $0x58] sm:$0xff] %v4584_v20  ;;  %v1199_v42 = vrot.slane %v4584_v20, 5  ;;  %v1532_v33 = vshrl.u32 %v4584_v20, 16  ;;  %v1535_v43 = vshll.u32 %v4584_v20, 16  ;;  %v1802_v44 = vrot.slane %v4584_v20, 6 }
 0x13c   :  { %v304_v45 = vpop.f32.mrb[48].mxu0  ;;  %v2058_v46 = vrot.slane %v4584_v20, 2  ;;  %v2600_v50 = vrot.slane %v4584_v20, 3 }
 0x13d   :  { %v3552_v60 = vpop.f32.mrb[49].mxu0  ;;  %v1200_v1 = vsel %vm1177_vm2, %v1197_v56, %v1199_v42  ;;  %v1534_v6 = vrot.slane %v1532_v33, 5  ;;  %v1537_v8 = vrot.slane %v1535_v43, 6  ;;  %v4608_v55 = vsel %vm1780_vm6, %v1800_v34, %v1802_v44 }
 0x13e   :  { %v307_v10 = vpop.f32.mrb[50].mxu0  ;;  %3710 = vmatprep.mubr.bf16.mxu1 %v1200_v1  ;;  %v4615_v13 = vsel %vm2038_vm7, %v2056_v37, %v2058_v46  ;;  %v2336_v56 = vrot.slane %v1532_v33, 2  ;;  %v2337_v14 = vrot.slane %v1535_v43, 3  ;;  %v335_v15 = vmax.f32 %v304_v45, 0.0 }
 0x13f   :  { %v336_v16 = vmax.f32 %v307_v10, 0.0  ;;  %v3553_v17 = vpop.f32.mrb[51].mxu0  ;;  %v4617_v18 = vor.u32 %v1537_v8, %v1534_v6  ;;  %v4624_v25 = vsel %vm2580_vm8, %v2598_v49, %v2600_v50  ;;  %v919_v6 = vrot.slane %v4569_v51, 1 }
 0x140   :  { %v4626_v27 = vor.u32 %v2337_v14, %v2336_v56  ;;  %v496_v10 = vor.u32 %v494_v62, %v492_v9  ;;  %v4148_v9 = vld [vmem:[%s5076_s2 + $0x88] sm:$0xff]  }
 0x141   :  { %v349_v60 = vpack.c.bf16 %v336_v16, %v335_v15  ;;  %v4631_v33 = vsel %vm1432_vm4, %v4601_v5, %v4617_v18 }
 0x142   :  { %v4633_v43 = vld [vmem:[#allocation2 + $0x58] sm:$0x1f]  ;;  %v4637_v45 = vsel %vm2291_vm5, %v2334_v41, %v4626_v27 }
 0x143   :  { %362 = vst [vmem:[#allocation2 + $0x60] sm:$0xff] %v349_v60  ;;  %v498_v1 = vshll.u32 %v4633_v43, 16  ;;  %v921_v8 = vrot.slane %v4633_v43, 1  ;;  %v502_v14 = vshrl.u32 %v4633_v43, 16  ;;  %v4169_v43 = vld [vmem:[%s5076_s2 + $0x1c8] sm:$0xff]  }
 0x145   :  { %v500_v56 = vrot.slane %v498_v1, 1  ;;  %v4648_v15 = vsel %vm899_vm9, %v919_v6, %v921_v8  ;;  %v4152_v1 = vld [vmem:[%s5076_s2 + $0x160] sm:$0xff]  }
 0x147   :  { %v501_v41 = vsel %vm409_vm3, %v496_v10, %v500_v56  ;;  %v504_v16 = vor.u32 %v502_v14, %v500_v56  ;;  %v1516_v10 = vrot.slane %v4559_v30, 5  ;;  %v1519_v56 = vrot.slane %v4556_v29, 6  ;;  %v4158_v14 = vld [vmem:[%s5076_s2 + $0xb8] sm:$0xff]  }
 0x148   :  { %3590 = vmatprep.mubr.bf16.mxu0 %v501_v41  ;;  %v4157_v41 = vld [vmem:[%s5076_s2 + $0x170] sm:$0xff]  }
 0x149   :  { %3591 = vmatmul.mubr.bf16.gmra.mrb[72].mxu0 %v504_v16  ;;  %v4160_v16 = vld [vmem:[%s5076_s2 + $0x180] sm:$0xff]  }
 0x14a   :  { %3610 = vmatprep.mubr.bf16.mxu0 %v4386_v40  ;;  %v1146_v17 = vld [vmem:[#allocation2 + $0x60] sm:$0x1]  ;;  %v4145_v40 = vld [vmem:[%s5076_s2 + $0x148] sm:$0xff]  }
 0x14b   :  { %v1201_v60 = vrot.slane %v1146_v17, 5  ;;  %v4717_v30 = vld [vmem:[#allocation2 + $0x60] sm:$0x3] }
 0x14c   :  { %v869_v17 = vld [vmem:[#allocation2] sm:$0xfe] }
 0x14d   :  { %v1202_v62 = vsel %vm1177_vm2, %v1199_v42, %v1201_v60  ;;  %v4150_v42 = vld [vmem:[%s5076_s2 + $0x90] sm:$0xff]   ;;  %v1541_v60 = vshrl.u32 %v4717_v30, 16 }
 0x14e   :  { %3711 = vmatmul.mubr.bf16.gmra.mrb[20].mxu1 %v1202_v62 }
 0x14f   :  { %3730 = vmatprep.mubr.bf16.mxu1 %v4402_v12  ;;  %v4151_v12 = vld [vmem:[%s5076_s2 + $0x98] sm:$0xff]  }
 0x151   :  { %3611 = vmatmul.mubr.bf16.vlgmr.msra.gmra.mrb[52].mxu0 %v4390_v48 }
 0x152   :  { %3614 = vmatprep.mubr.bf16.mxu0 %v4399_v11  ;;  %3635 = vmatpush3.bf16.msra.mxu0 %v4508_v59  ;;  %v4147_v59 = vld [vmem:[%s5076_s2 + $0x150] sm:$0xff]  }
 0x153   :  { %3636 = vmatprep.subr.bf16.mxu0 %v4148_v9 }
 0x156   :  { %3731 = vmatmul.mubr.bf16.vlgmr.msra.gmra.mrb[0].mxu1 %v4427_v32  ;;  %3637 = vmatpush3.bf16.msra.mxu0 %v4148_v9  ;;  %v4149_v32 = vld [vmem:[%s5076_s2 + $0x158] sm:$0xff]   ;;  %v901_v9 = vrot.slane %v4390_v48, 1 }
 0x157   :  { %3734 = vmatprep.mubr.bf16.mxu1 %v4452_v63  ;;  %3755 = vmatpush3.bf16.msra.mxu1 %v4498_v54  ;;  %v4153_v63 = vld [vmem:[%s5076_s2 + $0xa0] sm:$0xff]   ;;  %v4155_v54 = vld [vmem:[%s5076_s2 + $0xa8] sm:$0xff]  }
 0x158   :  { %3756 = vmatprep.subr.bf16.mxu1 %v4145_v40  ;;  %3638 = vmatprep.subr.bf16.mxu0 %v4150_v42 }
 0x159   :  { %3615 = vmatmul.mubr.bf16.gmra.mrb[56].mxu0 %v4420_v36 }
 0x15a   :  { %3618 = vmatprep.mubr.bf16.mxu0 %v4446_v61  ;;  %3639 = vmatpush3.bf16.msra.mxu0 %v4150_v42 }
 0x15b   :  { %3757 = vmatpush3.bf16.msra.mxu1 %v4145_v40  ;;  %3640 = vmatprep.subr.bf16.mxu0 %v4151_v12  ;;  %v1543_v40 = vrot.slane %v1541_v60, 5  ;;  %v4162_v60 = vld [vmem:[%s5076_s2 + $0x190] sm:$0xff]  }
 0x15c   :  { %3758 = vmatprep.subr.bf16.mxu1 %v4147_v59 }
 0x15e   :  { %3735 = vmatmul.mubr.bf16.gmra.mrb[4].mxu1 %v4479_v28  ;;  %3641 = vmatpush3.bf16.msra.mxu0 %v4151_v12  ;;  %v4154_v28 = vld [vmem:[%s5076_s2 + $0x168] sm:$0xff]   ;;  %v1760_v12 = vld [vmem:[#allocation2] sm:$0xc0] }
 0x15f   :  { %3738 = vmatprep.mubr.bf16.mxu1 %v4503_v58  ;;  %3759 = vmatpush3.bf16.msra.mxu1 %v4147_v59  ;;  %v4156_v58 = vld [vmem:[%s5076_s2 + $0xb0] sm:$0xff]   ;;  %v374_v59 = vld [vmem:[#allocation2 + $0x58] sm:$0xf] }
 0x160   :  { %3760 = vmatprep.subr.bf16.mxu1 %v4149_v32  ;;  %3642 = vmatprep.subr.bf16.mxu0 %v4153_v63 }
 0x161   :  { %3619 = vmatmul.mubr.bf16.gmra.mrb[60].mxu0 %v4473_v26 }
 0x162   :  { %3622 = vmatprep.mubr.bf16.mxu0 %v4500_v57  ;;  %3643 = vmatpush3.bf16.msra.mxu0 %v4153_v63 }
 0x163   :  { %3761 = vmatpush3.bf16.msra.mxu1 %v4149_v32  ;;  %3644 = vmatprep.subr.bf16.mxu0 %v4155_v54 }
 0x164   :  { %3762 = vmatprep.subr.bf16.mxu1 %v4152_v1 }
 0x166   :  { %3739 = vmatmul.mubr.bf16.gmra.mrb[8].mxu1 %v4523_v23  ;;  %3645 = vmatpush3.bf16.msra.mxu0 %v4155_v54  ;;  %v1520_v23 = vor.u32 %v1519_v56, %v1516_v10  ;;  %v1781_v54 = vrot.slane %v1760_v12, 6 }
 0x167   :  { %3742 = vmatprep.mubr.bf16.mxu1 %v4536_v53  ;;  %3763 = vmatpush3.bf16.msra.mxu1 %v4152_v1  ;;  %v4159_v53 = vld [vmem:[%s5076_s2 + $0x178] sm:$0xff]   ;;  %v1782_v1 = vrot.slane %v4390_v48, 6  ;;  %v1786_v48 = vrot.slane %v4420_v36, 6 }
 0x168   :  { %3764 = vmatprep.subr.bf16.mxu1 %v4154_v28  ;;  %3646 = vmatprep.subr.bf16.mxu0 %v4156_v58  ;;  %v1521_v29 = vsel %vm1432_vm4, %v4546_v19, %v1520_v23  ;;  %v900_v19 = vrot.slane %v869_v17, 1  ;;  %v1530_v62 = vsel %vm1432_vm4, %v1520_v23, %v4601_v5 }
 0x169   :  { %3623 = vmatmul.mubr.bf16.gmra.mrb[64].mxu0 %v4520_v22 }
 0x16a   :  { %3626 = vmatprep.mubr.bf16.mxu0 %v4533_v52  ;;  %3647 = vmatpush3.bf16.msra.mxu0 %v4156_v58  ;;  %v902_v32 = vsel %vm899_vm9, %v900_v19, %v901_v9  ;;  %v905_v58 = vrot.slane %v4420_v36, 1  ;;  %v1788_v19 = vrot.slane %v4446_v61, 6 }
 0x16b   :  { %3765 = vmatpush3.bf16.msra.mxu1 %v4154_v28  ;;  %3648 = vmatprep.subr.bf16.mxu0 %v4158_v14  ;;  %v903_v28 = vrot.slane %v4399_v11, 1 }
 0x16c   :  { %3766 = vmatprep.subr.bf16.mxu1 %v4157_v41 }
 0x16d   :  { %v904_v10 = vsel %vm899_vm9, %v901_v9, %v903_v28  ;;  %v906_v56 = vsel %vm899_vm9, %v903_v28, %v905_v58  ;;  %v911_v9 = vrot.slane %v4500_v57, 1  ;;  %v915_v28 = vrot.slane %v4533_v52, 1 }
 0x16e   :  { %3743 = vmatmul.mubr.bf16.gmra.mrb[12].mxu1 %v4552_v24  ;;  %3649 = vmatpush3.bf16.msra.mxu0 %v4158_v14  ;;  %v1544_v24 = vshll.u32 %v4717_v30, 16  ;;  %v1784_v14 = vrot.slane %v4399_v11, 6 }
 0x16f   :  { %3746 = vmatprep.mubr.bf16.mxu1 %v1521_v29  ;;  %3767 = vmatpush3.bf16.msra.mxu1 %v4157_v41  ;;  %v907_v41 = vrot.slane %v4446_v61, 1 }
 0x170   :  { %3768 = vmatprep.subr.bf16.mxu1 %v4159_v53  ;;  %v1546_v42 = vrot.slane %v1544_v24, 6  ;;  %v1785_v23 = vsel %vm1780_vm6, %v1782_v1, %v1784_v14  ;;  %v1787_v29 = vsel %vm1780_vm6, %v1784_v14, %v1786_v48  ;;  %v4166_v14 = vld [vmem:[%s5076_s2 + $0x1b0] sm:$0xff]  }
 0x171   :  { %3627 = vmatmul.mubr.bf16.gmra.mrb[68].mxu0 %v4548_v21  ;;  %v908_v17 = vsel %vm899_vm9, %v905_v58, %v907_v41 }
 0x172   :  { %3630 = vmatprep.mubr.bf16.mxu0 %v4569_v51  ;;  %v1547_v63 = vor.u32 %v1546_v42, %v1543_v40  ;;  %v1789_v40 = vsel %vm1780_vm6, %v1786_v48, %v1788_v19  ;;  %v913_v42 = vrot.slane %v4520_v22, 1 }
 0x173   :  { %3769 = vmatpush3.bf16.msra.mxu1 %v4159_v53  ;;  %v909_v53 = vrot.slane %v4473_v26, 1 }
 0x174   :  { %3794 = vmatprep.subr.bf16.mxu1 %v4160_v16  ;;  %v1548_v5 = vsel %vm1432_vm4, %v4617_v18, %v1547_v63  ;;  %v4161_v18 = vld [vmem:[%s5076_s2 + $0x188] sm:$0xff]   ;;  %v914_v63 = vsel %vm899_vm9, %v911_v9, %v913_v42 }
 0x175   :  { %v910_v24 = vsel %vm899_vm9, %v907_v41, %v909_v53  ;;  %v1796_v41 = vrot.slane %v4533_v52, 6 }
 0x176   :  { %3747 = vmatmul.mubr.bf16.gmra.mrb[16].mxu1 %v1530_v62  ;;  %v1790_v62 = vrot.slane %v4473_v26, 6 }
 0x177   :  { %3750 = vmatprep.mubr.bf16.mxu1 %v4631_v33  ;;  %v1783_v33 = vsel %vm1780_vm6, %v1781_v54, %v1782_v1  ;;  %v1792_v54 = vrot.slane %v4500_v57, 6  ;;  %v1794_v1 = vrot.slane %v4520_v22, 6 }
 0x178   :  { %v1791_v12 = vsel %vm1780_vm6, %v1788_v19, %v1790_v62  ;;  %v4799_v19 = vld [vmem:[#allocation2 + $0x8] sm:$0xfc] }
 0x179   :  { %3631 = vmatmul.mubr.bf16.gmra.mrb[76].mxu0 %v374_v59  ;;  %v912_v59 = vsel %vm899_vm9, %v909_v53, %v911_v9  ;;  %v1793_v58 = vsel %vm1780_vm6, %v1790_v62, %v1792_v54  ;;  %v1797_v53 = vsel %vm1780_vm6, %v1794_v1, %v1796_v41  ;;  %v2039_v62 = vrot.slane %v4799_v19, 2 }
 0x17a   :  { %3650 = vmatprep.mubr.bf16.mxu0 %v902_v32  ;;  %v4164_v32 = vld [vmem:[%s5076_s2 + $0x1a0] sm:$0xff]  }
 0x17e   :  { %3751 = vmatmul.mubr.bf16.gmra.mrb[24].mxu1 %v1548_v5  ;;  %v4165_v5 = vld [vmem:[%s5076_s2 + $0x1a8] sm:$0xff]  }
 0x17f   :  { %3770 = vmatprep.mubr.bf16.mxu1 %v1783_v33  ;;  %v917_v33 = vrot.slane %v4548_v21, 1 }
 0x181   :  { %3651 = vmatmul.mubr.bf16.vlgmr.msra.gmra.mrb[52].mxu0 %v904_v10  ;;  %v1795_v10 = vsel %vm1780_vm6, %v1792_v54, %v1794_v1  ;;  %v918_v48 = vsel %vm899_vm9, %v915_v28, %v917_v33 }
 0x182   :  { %3654 = vmatprep.mubr.bf16.mxu0 %v906_v56  ;;  %v916_v56 = vsel %vm899_vm9, %v913_v42, %v915_v28  ;;  %v4174_v28 = vld [vmem:[%s5076_s2 + $0x1f0] sm:$0xff]  }
 0x186   :  { %3771 = vmatmul.mubr.bf16.vlgmr.msra.gmra.mrb[0].mxu1 %v1785_v23  ;;  %v4167_v23 = vld [vmem:[%s5076_s2 + $0x1b8] sm:$0xff]  }
 0x187   :  { %3774 = vmatprep.mubr.bf16.mxu1 %v1787_v29  ;;  %3795 = vmatpush3.bf16.msra.mxu1 %v4160_v16  ;;  %v4163_v16 = vld [vmem:[%s5076_s2 + $0x198] sm:$0xff]  }
 0x188   :  { %3796 = vmatprep.subr.bf16.mxu1 %v4161_v18 }
 0x189   :  { %3655 = vmatmul.mubr.bf16.gmra.mrb[56].mxu0 %v908_v17  ;;  %v920_v17 = vsel %vm899_vm9, %v917_v33, %v919_v6  ;;  %v1804_v6 = vrot.slane %v4717_v30, 6  ;;  %v4171_v30 = vld [vmem:[%s5076_s2 + $0x1d8] sm:$0xff]  }
 0x18a   :  { %3658 = vmatprep.mubr.bf16.mxu0 %v910_v24 }
 0x18b   :  { %3797 = vmatpush3.bf16.msra.mxu1 %v4161_v18  ;;  %v1798_v18 = vrot.slane %v4548_v21, 6  ;;  %v1805_v9 = vsel %vm1780_vm6, %v1802_v44, %v1804_v6  ;;  %v4170_v44 = vld [vmem:[%s5076_s2 + $0x1d0] sm:$0xff]  }
 0x18c   :  { %3798 = vmatprep.subr.bf16.mxu1 %v4162_v60 }
 0x18d   :  { %v1799_v29 = vsel %vm1780_vm6, %v1796_v41, %v1798_v18  ;;  %v1801_v24 = vsel %vm1780_vm6, %v1798_v18, %v1800_v34  ;;  %v2293_v41 = vshrl.u32 %v4799_v19, 16  ;;  %v2296_v18 = vshll.u32 %v4799_v19, 16 }
 0x18e   :  { %3775 = vmatmul.mubr.bf16.gmra.mrb[4].mxu1 %v1789_v40 }
 0x18f   :  { %3778 = vmatprep.mubr.bf16.mxu1 %v1791_v12  ;;  %3799 = vmatpush3.bf16.msra.mxu1 %v4162_v60  ;;  %v4168_v60 = vld [vmem:[%s5076_s2 + $0x1c0] sm:$0xff]  }
 0x190   :  { %3800 = vmatprep.subr.bf16.mxu1 %v4163_v16  ;;  %v4172_v12 = vld [vmem:[%s5076_s2 + $0x1e0] sm:$0xff]  }
 0x191   :  { %3659 = vmatmul.mubr.bf16.gmra.mrb[60].mxu0 %v912_v59  ;;  %v2050_v59 = vrot.slane %v4520_v22, 2 }
 0x192   :  { %3662 = vmatprep.mubr.bf16.mxu0 %v914_v63  ;;  %v4173_v63 = vld [vmem:[%s5076_s2 + $0x1e8] sm:$0xff]  }
 0x193   :  { %3801 = vmatpush3.bf16.msra.mxu1 %v4163_v16  ;;  %v2044_v16 = vrot.slane %v4446_v61, 2  ;;  %v2048_v61 = vrot.slane %v4500_v57, 2 }
 0x194   :  { %3802 = vmatprep.subr.bf16.mxu1 %v4164_v32 }
 0x195   :  { %v2051_v54 = vsel %vm2038_vm7, %v2048_v61, %v2050_v59 }
 0x196   :  { %3779 = vmatmul.mubr.bf16.gmra.mrb[8].mxu1 %v1793_v58  ;;  %v4175_v58 = vld [vmem:[%s5076_s2 + $0x1f8] sm:$0xff]  }
 0x197   :  { %3782 = vmatprep.mubr.bf16.mxu1 %v1795_v10  ;;  %3803 = vmatpush3.bf16.msra.mxu1 %v4164_v32  ;;  %v2052_v32 = vrot.slane %v4533_v52, 2 }
 0x198   :  { %3804 = vmatprep.subr.bf16.mxu1 %v4165_v5 }
 0x199   :  { %3663 = vmatmul.mubr.bf16.gmra.mrb[64].mxu0 %v916_v56  ;;  %v2053_v1 = vsel %vm2038_vm7, %v2050_v59, %v2052_v32  ;;  %v2018_v56 = vld [vmem:[#allocation2 + $0x60] sm:$0x3f] }
 0x19a   :  { %3666 = vmatprep.mubr.bf16.mxu0 %v918_v48  ;;  %v2060_v48 = vrot.slane %v2018_v56, 2 }
 0x19b   :  { %3805 = vmatpush3.bf16.msra.mxu1 %v4165_v5  ;;  %v2054_v5 = vrot.slane %v4548_v21, 2 }
 0x19c   :  { %3806 = vmatprep.subr.bf16.mxu1 %v4166_v14 }
 0x19d   :  { %v2055_v33 = vsel %vm2038_vm7, %v2052_v32, %v2054_v5  ;;  %v2057_v10 = vsel %vm2038_vm7, %v2054_v5, %v2056_v37  ;;  %v2061_v37 = vsel %vm2038_vm7, %v2058_v46, %v2060_v48  ;;  %v4178_v46 = vld [vmem:[%s5076_s2 + $0x210] sm:$0xff]   ;;  %v2592_v32 = vrot.slane %v4520_v22, 3 }
 0x19e   :  { %3783 = vmatmul.mubr.bf16.gmra.mrb[12].mxu1 %v1797_v53  ;;  %v2298_v53 = vrot.slane %v2296_v18, 3  ;;  %v2596_v5 = vrot.slane %v4548_v21, 3 }
 0x19f   :  { %3786 = vmatprep.mubr.bf16.mxu1 %v1799_v29  ;;  %3807 = vmatpush3.bf16.msra.mxu1 %v4166_v14  ;;  %v4176_v14 = vld [vmem:[%s5076_s2 + $0x200] sm:$0xff]  }
 0x1a0   :  { %3808 = vmatprep.subr.bf16.mxu1 %v4167_v23  ;;  %v2599_v22 = vsel %vm2580_vm8, %v2596_v5, %v2598_v49 }
 0x1a1   :  { %3667 = vmatmul.mubr.bf16.gmra.mrb[68].mxu0 %v920_v17 }
 0x1a2   :  { %3670 = vmatprep.mubr.bf16.mxu0 %v4648_v15  ;;  %v2040_v15 = vrot.slane %v4399_v11, 2 }
 0x1a3   :  { %3809 = vmatpush3.bf16.msra.mxu1 %v4167_v23  ;;  %v2295_v23 = vrot.slane %v2293_v41, 2 }
 0x1a4   :  { %3834 = vmatprep.subr.bf16.mxu1 %v4168_v60  ;;  %v2041_v34 = vsel %vm2038_vm7, %v2039_v62, %v2040_v15 }
 0x1a5   :  { %v2299_v29 = vor.u32 %v2298_v53, %v2295_v23 }
 0x1a6   :  { %3787 = vmatmul.mubr.bf16.gmra.mrb[16].mxu1 %v1801_v24 }
 0x1a7   :  { %3790 = vmatprep.mubr.bf16.mxu1 %v4608_v55  ;;  %v2042_v55 = vrot.slane %v4420_v36, 2  ;;  %v2046_v36 = vrot.slane %v4473_v26, 2  ;;  %v2303_v17 = vsel %vm2291_vm5, %v2299_v29, %v4429_v38  ;;  %v4179_v38 = vld [vmem:[%s5076_s2 + $0x218] sm:$0xff]  }
 0x1a9   :  { %3671 = vmatmul.mubr.bf16.gmra.mrb[80].mxu0 %v921_v8  ;;  %v2043_v8 = vsel %vm2038_vm7, %v2040_v15, %v2042_v55  ;;  %v2045_v11 = vsel %vm2038_vm7, %v2042_v55, %v2044_v16  ;;  %v2047_v40 = vsel %vm2038_vm7, %v2044_v16, %v2046_v36  ;;  %v2049_v42 = vsel %vm2038_vm7, %v2046_v36, %v2048_v61  ;;  %v2560_v15 = vld [vmem:[#allocation2 + $0x8] sm:$0xf8]  ;;  %v4195_v16 = vld [vmem:[#allocation2 + $0x18] sm:$0xff] }
 0x1ae   :  { %3791 = vmatmul.mubr.bf16.gmra.mrb[28].mxu1 %v1805_v9  ;;  %v2581_v9 = vrot.slane %v2560_v15, 3  ;;  %v4199_v15 = vmov 0  }
 0x1af   :  { %3810 = vmatprep.mubr.bf16.mxu1 %v2041_v34  ;;  %v4194_v34 = vld [vmem:[#allocation2 + $0x10] sm:$0xff]  ;;  %2895 = vmatprep.subr.bf16.mxu0 %v4199_v15 }
 0x1b0   :  { %v2582_v55 = vrot.slane %v4194_v34, 3 }
 0x1b6   :  { %3811 = vmatmul.mubr.bf16.vlgmr.msra.gmra.mrb[0].mxu1 %v2043_v8 }
 0x1b7   :  { %3814 = vmatprep.mubr.bf16.mxu1 %v2045_v11  ;;  %3835 = vmatpush3.bf16.msra.mxu1 %v4168_v60  ;;  %v4177_v60 = vld [vmem:[%s5076_s2 + $0x208] sm:$0xff]  }
 0x1b8   :  { %3836 = vmatprep.subr.bf16.mxu1 %v4169_v43 }
 0x1bb   :  { %3837 = vmatpush3.bf16.msra.mxu1 %v4169_v43  ;;  %v4196_v43 = vld [vmem:[#allocation2 + $0x20] sm:$0xff] }
 0x1bc   :  { %3838 = vmatprep.subr.bf16.mxu1 %v4170_v44  ;;  %v2586_v8 = vrot.slane %v4196_v43, 3 }
 0x1be   :  { %3815 = vmatmul.mubr.bf16.gmra.mrb[4].mxu1 %v2047_v40 }
 0x1bf   :  { %3818 = vmatprep.mubr.bf16.mxu1 %v2049_v42  ;;  %3839 = vmatpush3.bf16.msra.mxu1 %v4170_v44  ;;  %v2590_v44 = vrot.slane %v4500_v57, 3 }
 0x1c0   :  { %3840 = vmatprep.subr.bf16.mxu1 %v4171_v30 }
 0x1c1   :  { %v2593_v57 = vsel %vm2580_vm8, %v2590_v44, %v2592_v32 }
 0x1c3   :  { %3841 = vmatpush3.bf16.msra.mxu1 %v4171_v30 }
 0x1c4   :  { %3842 = vmatprep.subr.bf16.mxu1 %v4172_v12 }
 0x1c6   :  { %3819 = vmatmul.mubr.bf16.gmra.mrb[8].mxu1 %v2051_v54  ;;  %v2594_v54 = vrot.slane %v4533_v52, 3 }
 0x1c7   :  { %3822 = vmatprep.mubr.bf16.mxu1 %v2053_v1  ;;  %3843 = vmatpush3.bf16.msra.mxu1 %v4172_v12 }
 0x1c8   :  { %3844 = vmatprep.subr.bf16.mxu1 %v4173_v63 }
 0x1cb   :  { %3845 = vmatpush3.bf16.msra.mxu1 %v4173_v63 }
 0x1cc   :  { %3846 = vmatprep.subr.bf16.mxu1 %v4174_v28 }
 0x1ce   :  { %3823 = vmatmul.mubr.bf16.gmra.mrb[12].mxu1 %v2055_v33 }
 0x1cf   :  { %3826 = vmatprep.mubr.bf16.mxu1 %v2057_v10  ;;  %3847 = vmatpush3.bf16.msra.mxu1 %v4174_v28  ;;  %v2595_v28 = vsel %vm2580_vm8, %v2592_v32, %v2594_v54 }
 0x1d0   :  { %3848 = vmatprep.subr.bf16.mxu1 %v4175_v58 }
 0x1d3   :  { %3849 = vmatpush3.bf16.msra.mxu1 %v4175_v58  ;;  %v2597_v58 = vsel %vm2580_vm8, %v2594_v54, %v2596_v5 }
 0x1d4   :  { %3874 = vmatprep.subr.bf16.mxu1 %v4176_v14 }
 0x1d6   :  { %3827 = vmatmul.mubr.bf16.gmra.mrb[16].mxu1 %v4615_v13 }
 0x1d7   :  { %3830 = vmatprep.mubr.bf16.mxu1 %v2061_v37 }
 0x1de   :  { %3831 = vmatmul.mubr.bf16.gmra.mrb[32].mxu1 %v2060_v48 }
 0x1df   :  { %3850 = vmatprep.mubr.bf16.mxu1 %v2303_v17 }
 0x1e6   :  { %3851 = vmatmul.mubr.bf16.vlgmr.msra.gmra.mrb[0].mxu1 %v4463_v7  ;;  %v4180_v7 = vld [vmem:[%s5076_s2 + $0x220] sm:$0xff]  }
 0x1e7   :  { %3854 = vmatprep.mubr.bf16.mxu1 %v4488_v39  ;;  %3875 = vmatpush3.bf16.msra.mxu1 %v4176_v14  ;;  %v4181_v39 = vld [vmem:[%s5076_s2 + $0x228] sm:$0xff]  }
 0x1e8   :  { %3876 = vmatprep.subr.bf16.mxu1 %v4177_v60 }
 0x1eb   :  { %3877 = vmatpush3.bf16.msra.mxu1 %v4177_v60 }
 0x1ec   :  { %3878 = vmatprep.subr.bf16.mxu1 %v4178_v46 }
 0x1ee   :  { %3855 = vmatmul.mubr.bf16.gmra.mrb[4].mxu1 %v4515_v4  ;;  %v4880_v4 = vld [vmem:[#allocation2 + $0x60] sm:$0x7f] }
 0x1ef   :  { %3858 = vmatprep.mubr.bf16.mxu1 %v4529_v31  ;;  %3879 = vmatpush3.bf16.msra.mxu1 %v4178_v46  ;;  %v4182_v31 = vld [vmem:[%s5076_s2 + $0x230] sm:$0xff]   ;;  %v2341_v13 = vshrl.u32 %v4880_v4, 16  ;;  %v2344_v24 = vshll.u32 %v4880_v4, 16  ;;  %v2602_v52 = vrot.slane %v4880_v4, 3 }
 0x1f0   :  { %3880 = vmatprep.subr.bf16.mxu1 %v4179_v38 }
 0x1f1   :  { %v2346_v19 = vrot.slane %v2344_v24, 3  ;;  %v2603_v33 = vsel %vm2580_vm8, %v2600_v50, %v2602_v52 }
 0x1f3   :  { %3881 = vmatpush3.bf16.msra.mxu1 %v4179_v38 }
 0x1f4   :  { %3882 = vmatprep.subr.bf16.mxu1 %v4180_v7 }
 0x1f6   :  { %3859 = vmatmul.mubr.bf16.gmra.mrb[8].mxu1 %v4542_v2  ;;  %v4183_v2 = vld [vmem:[%s5076_s2 + $0x238] sm:$0xff]  }
 0x1f7   :  { %3862 = vmatprep.mubr.bf16.mxu1 %v4562_v35  ;;  %3883 = vmatpush3.bf16.msra.mxu1 %v4180_v7  ;;  %v2343_v35 = vrot.slane %v2341_v13, 2 }
 0x1f8   :  { %3884 = vmatprep.subr.bf16.mxu1 %v4181_v39 }
 0x1f9   :  { %v2347_v6 = vor.u32 %v2346_v19, %v2343_v35 }
 0x1fb   :  { %3885 = vmatpush3.bf16.msra.mxu1 %v4181_v39  ;;  %v2348_v62 = vsel %vm2291_vm5, %v4626_v27, %v2347_v6  ;;  %v2588_v27 = vrot.slane %v4473_v26, 3 }
 0x1fc   :  { %3886 = vmatprep.subr.bf16.mxu1 %v4182_v31 }
 0x1fd   :  { %v2589_v30 = vsel %vm2580_vm8, %v2586_v8, %v2588_v27  ;;  %v2591_v42 = vsel %vm2580_vm8, %v2588_v27, %v2590_v44 }
 0x1fe   :  { %3863 = vmatmul.mubr.bf16.gmra.mrb[12].mxu1 %v4577_v3  ;;  %v2583_v3 = vsel %vm2580_vm8, %v2581_v9, %v2582_v55 }
 0x1ff   :  { %3866 = vmatprep.mubr.bf16.mxu1 %v4596_v47  ;;  %3887 = vmatpush3.bf16.msra.mxu1 %v4182_v31  ;;  %v2584_v47 = vrot.slane %v4195_v16, 3 }
 0x200   :  { %3888 = vmatprep.subr.bf16.mxu1 %v4183_v2 }
 0x201   :  { %v2585_v11 = vsel %vm2580_vm8, %v2582_v55, %v2584_v47 }
 0x203   :  { %3889 = vmatpush3.bf16.msra.mxu1 %v4183_v2 }
 0x206   :  { %3867 = vmatmul.mubr.bf16.gmra.mrb[16].mxu1 %v4637_v45  ;;  %v2587_v45 = vsel %vm2580_vm8, %v2584_v47, %v2586_v8 }
 0x207   :  { %3870 = vmatprep.mubr.bf16.mxu1 %v2348_v62 }
 0x20e   :  { %3871 = vmatmul.mubr.bf16.gmra.mrb[36].mxu1 %v2347_v6 }
 0x20f   :  { %3890 = vmatprep.mubr.bf16.mxu1 %v2583_v3 }
 0x216   :  { %3891 = vmatmul.mubr.bf16.vlgmr.msra.gmra.mrb[0].mxu1 %v2585_v11 }
 0x217   :  { %3894 = vmatprep.mubr.bf16.mxu1 %v2587_v45 }
 0x21c   :  { %v3592_v36 = vpop.f32.mrb[72].mxu0 }
 0x21d   :  { %v679_v61 = vpop.f32.mrb[73].mxu0 }
 0x21e   :  { %v3593_v40 = vpop.f32.mrb[74].mxu0  ;;  %3895 = vmatmul.mubr.bf16.gmra.mrb[4].mxu1 %v2589_v30 }
 0x21f   :  { %v682_v12 = vpop.f32.mrb[75].mxu0  ;;  %3898 = vmatprep.mubr.bf16.mxu1 %v2591_v42 }
 0x221   :  { %v3712_v59 = vpop.f32.mrb[20].mxu1 }
 0x222   :  { %v1377_v63 = vpop.f32.mrb[21].mxu1 }
 0x223   :  { %v3713_v1 = vpop.f32.mrb[22].mxu1 }
 0x224   :  { %v1380_v26 = vpop.f32.mrb[23].mxu1  ;;  %v4960_v1 = vld [vmem:[%s5077_s4] sm:$0xff] }
 0x226   :  { %3899 = vmatmul.mubr.bf16.gmra.mrb[8].mxu1 %v2593_v57 }
 0x227   :  { %3902 = vmatprep.mubr.bf16.mxu1 %v2595_v28 }
 0x22e   :  { %3903 = vmatmul.mubr.bf16.gmra.mrb[12].mxu1 %v2597_v58 }
 0x22f   :  { %3906 = vmatprep.mubr.bf16.mxu1 %v2599_v22 }
 0x236   :  { %3907 = vmatmul.mubr.bf16.gmra.mrb[16].mxu1 %v4624_v25 }
 0x237   :  { %3910 = vmatprep.mubr.bf16.mxu1 %v2603_v33 }
 0x23e   :  { %3911 = vmatmul.mubr.bf16.gmra.mrb[40].mxu1 %v2602_v52 }
 0x24c   :  { %v3632_v10 = vpop.f32.mrb[76].mxu0 }
 0x24d   :  { %v864_v21 = vadd.f32 %v3632_v10, %v3592_v36  ;;  %v855_v56 = vpop.f32.mrb[77].mxu0 }
 0x24e   :  { %v856_v14 = vadd.f32 %v855_v56, %v679_v61  ;;  %v3633_v48 = vpop.f32.mrb[78].mxu0 }
 0x24f   :  { %v858_v41 = vpop.f32.mrb[79].mxu0 }
 0x250   :  { %v859_v51 = vadd.f32 %v858_v41, %v682_v12 }
 0x251   :  { %v3752_v18 = vpop.f32.mrb[24].mxu1 }
 0x252   :  { %v1723_v49 = vpop.f32.mrb[25].mxu1 }
 0x253   :  { %v3753_v37 = vpop.f32.mrb[26].mxu1 }
 0x254   :  { %v4916_v23 = vpop.f32.mrb[52].mxu0  ;;  %v1726_v53 = vpop.f32.mrb[27].mxu1 }
 0x255   :  { %v4918_v25 = vpop.f32.mrb[53].mxu0 }
 0x256   :  { %v4920_v20 = vpop.f32.mrb[54].mxu0 }
 0x257   :  { %v4922_v50 = vpop.f32.mrb[55].mxu0 }
 0x25c   :  { %v4924_v29 = vpop.f32.mrb[56].mxu0 }
 0x25d   :  { %v4926_v17 = vpop.f32.mrb[57].mxu0 }
 0x25e   :  { %v4928_v60 = vpop.f32.mrb[58].mxu0 }
 0x25f   :  { %v4930_v46 = vpop.f32.mrb[59].mxu0 }
 0x264   :  { %v4932_v38 = vpop.f32.mrb[60].mxu0 }
 0x265   :  { %v4934_v7 = vpop.f32.mrb[61].mxu0 }
 0x266   :  { %v4936_v39 = vpop.f32.mrb[62].mxu0 }
 0x267   :  { %v4938_v4 = vpop.f32.mrb[63].mxu0 }
 0x26c   :  { %v4940_v31 = vpop.f32.mrb[64].mxu0 }
 0x26d   :  { %v4942_v13 = vpop.f32.mrb[65].mxu0 }
 0x26e   :  { %v4944_v24 = vpop.f32.mrb[66].mxu0 }
 0x26f   :  { %v4946_v2 = vpop.f32.mrb[67].mxu0 }
 0x274   :  { %v4948_v35 = vpop.f32.mrb[68].mxu0 }
 0x275   :  { %v4950_v19 = vpop.f32.mrb[69].mxu0 }
 0x276   :  { %v4952_v6 = vpop.f32.mrb[70].mxu0 }
 0x277   :  { %v4954_v62 = vpop.f32.mrb[71].mxu0 }
 0x27c   :  { %v3672_v9 = vpop.f32.mrb[80].mxu0 }
 0x27d   :  { %v1133_v34 = vadd.f32 %v3672_v9, %v864_v21  ;;  %v1097_v55 = vpop.f32.mrb[81].mxu0 }
 0x27e   :  { %v1131_v3 = vadd.f32 %v1097_v55, %v856_v14  ;;  %v3673_v16 = vpop.f32.mrb[82].mxu0 }
 0x27f   :  { %v1413_v47 = vadd.f32 %v3712_v59, %v1133_v34  ;;  %v1100_v43 = vpop.f32.mrb[83].mxu0  ;;  %v3283_v59 = vcombine.high %v4960_v1, %v4960_v1 }
 0x280   :  { %v1411_v8 = vadd.f32 %v1377_v63, %v1131_v3  ;;  %v1132_v11 = vadd.f32 %v1100_v43, %v859_v51  ;;  %v4973_v51 = vld [vmem:[%s5079_s3] ss:$0 sm:$0xff] }
 0x281   :  { %v1759_v45 = vadd.f32 %v3752_v18, %v1413_v47  ;;  %v3792_v27 = vpop.f32.mrb[28].mxu1  ;;  %3284 = vmatprep.mubr.msk.bf16.mxu0 %vm2887_vm10, %v3283_v59 }
 0x282   :  { %v1412_v44 = vadd.f32 %v1380_v26, %v1132_v11  ;;  %v1757_v36 = vadd.f32 %v1723_v49, %v1411_v8  ;;  %v1980_v61 = vpop.f32.mrb[29].mxu1 }
 0x283   :  { %v2016_v30 = vadd.f32 %v3792_v27, %v1759_v45  ;;  %v3793_v40 = vpop.f32.mrb[30].mxu1 }
 0x284   :  { %v2014_v42 = vadd.f32 %v1980_v61, %v1757_v36  ;;  %v1758_v12 = vadd.f32 %v1726_v53, %v1412_v44  ;;  %v1983_v32 = vpop.f32.mrb[31].mxu1 }
 0x286   :  { %v2015_v54 = vadd.f32 %v1983_v32, %v1758_v12 }
 0x2b1   :  { %v3832_v63 = vpop.f32.mrb[32].mxu1 }
 0x2b2   :  { %v2272_v26 = vadd.f32 %v3832_v63, %v2016_v30  ;;  %v2236_v57 = vpop.f32.mrb[33].mxu1 }
 0x2b3   :  { %v2270_v28 = vadd.f32 %v2236_v57, %v2014_v42  ;;  %v3833_v5 = vpop.f32.mrb[34].mxu1 }
 0x2b4   :  { %v2239_v58 = vpop.f32.mrb[35].mxu1 }
 0x2b5   :  { %v2271_v22 = vadd.f32 %v2239_v58, %v2015_v54 }
 0x2e1   :  { %v3872_v52 = vpop.f32.mrb[36].mxu1 }
 0x2e2   :  { %v4964_v33 = vadd.f32 %v3872_v52, %v2272_v26  ;;  %v2523_v10 = vpop.f32.mrb[37].mxu1 }
 0x2e3   :  { %v4966_v21 = vadd.f32 %v2523_v10, %v2270_v28  ;;  %v3873_v56 = vpop.f32.mrb[38].mxu1 }
 0x2e4   :  { %v2526_v14 = vpop.f32.mrb[39].mxu1 }
 0x2e5   :  { %v4968_v48 = vadd.f32 %v2526_v14, %v2271_v22 }
 0x2e9   :  { %v3892_v41 = vpop.f32.mrb[0].mxu1 }
 0x2ea   :  { %v3934_v18 = vadd.f32 %v3892_v41, %v4916_v23  ;;  %v2698_v49 = vpop.f32.mrb[1].mxu1 }
 0x2eb   :  { %v3935_v37 = vadd.f32 %v2698_v49, %v4918_v25  ;;  %v3893_v53 = vpop.f32.mrb[2].mxu1 }
 0x2ec   :  { %v2824_v9 = vadd.f32 %v3934_v18, %v4973_v51  ;;  %v3936_v34 = vadd.f32 %v3893_v53, %v4920_v20  ;;  %v2701_v55 = vpop.f32.mrb[3].mxu1 }
 0x2ed   :  { %v2822_v3 = vadd.f32 %v3935_v37, %v4973_v51  ;;  %v3937_v16 = vadd.f32 %v2701_v55, %v4922_v50 }
 0x2ee   :  { %v2825_v47 = vadd.f32 %v3936_v34, %v4973_v51  ;;  %v2847_v8 = vmax.f32 %v2824_v9, 0.0 }
 0x2ef   :  { %v2823_v43 = vadd.f32 %v3937_v16, %v4973_v51  ;;  %v2845_v23 = vmax.f32 %v2822_v3, 0.0 }
 0x2f0   :  { %v2848_v11 = vmax.f32 %v2825_v47, 0.0 }
 0x2f1   :  { %v2846_v45 = vmax.f32 %v2823_v43, 0.0  ;;  %v3896_v27 = vpop.f32.mrb[4].mxu1 }
 0x2f2   :  { %v2869_v25 = vpack.c.bf16 %v2848_v11, %v2847_v8  ;;  %v3938_v44 = vadd.f32 %v3896_v27, %v4924_v29  ;;  %v2714_v36 = vpop.f32.mrb[5].mxu1 }
 0x2f3   :  { %v2868_v61 = vpack.c.bf16 %v2846_v45, %v2845_v23  ;;  %v3939_v20 = vadd.f32 %v2714_v36, %v4926_v17  ;;  %v3897_v30 = vpop.f32.mrb[6].mxu1 }
 0x2f4   :  { %v2828_v40 = vadd.f32 %v3938_v44, %v4973_v51  ;;  %v3940_v50 = vadd.f32 %v3897_v30, %v4928_v60  ;;  %v2717_v42 = vpop.f32.mrb[7].mxu1 }
 0x2f5   :  { %v2826_v12 = vadd.f32 %v3939_v20, %v4973_v51  ;;  %v3941_v32 = vadd.f32 %v2717_v42, %v4930_v46  ;;  %2896 = vmatpush1.bf16.msra.mxu0 %v2868_v61 }
 0x2f6   :  { %v2829_v54 = vadd.f32 %v3940_v50, %v4973_v51  ;;  %2897 = vmatprep.subr.bf16.mxu0 %v4199_v15  ;;  %v2851_v59 = vmax.f32 %v2828_v40, 0.0 }
 0x2f7   :  { %v2827_v29 = vadd.f32 %v3941_v32, %v4973_v51  ;;  %v2849_v17 = vmax.f32 %v2826_v12, 0.0 }
 0x2f8   :  { %v2852_v63 = vmax.f32 %v2829_v54, 0.0 }
 0x2f9   :  { %v2850_v26 = vmax.f32 %v2827_v29, 0.0  ;;  %v3900_v57 = vpop.f32.mrb[8].mxu1  ;;  %2898 = vmatpush1.bf16.msra.mxu0 %v2869_v25 }
 0x2fa   :  { %v2871_v28 = vpack.c.bf16 %v2852_v63, %v2851_v59  ;;  %v3942_v60 = vadd.f32 %v3900_v57, %v4932_v38  ;;  %v2730_v5 = vpop.f32.mrb[9].mxu1  ;;  %2899 = vmatprep.subr.bf16.mxu0 %v4199_v15 }
 0x2fb   :  { %v2870_v46 = vpack.c.bf16 %v2850_v26, %v2849_v17  ;;  %v3943_v58 = vadd.f32 %v2730_v5, %v4934_v7  ;;  %v3901_v22 = vpop.f32.mrb[10].mxu1 }
 0x2fc   :  { %v2832_v52 = vadd.f32 %v3942_v60, %v4973_v51  ;;  %v3944_v10 = vadd.f32 %v3901_v22, %v4936_v39  ;;  %v2733_v56 = vpop.f32.mrb[11].mxu1 }
 0x2fd   :  { %v2830_v14 = vadd.f32 %v3943_v58, %v4973_v51  ;;  %v3945_v41 = vadd.f32 %v2733_v56, %v4938_v4  ;;  %2900 = vmatpush1.bf16.msra.mxu0 %v2870_v46 }
 0x2fe   :  { %v2833_v18 = vadd.f32 %v3944_v10, %v4973_v51  ;;  %2901 = vmatprep.subr.bf16.mxu0 %v4199_v15  ;;  %v2855_v49 = vmax.f32 %v2832_v52, 0.0 }
 0x2ff   :  { %v2831_v38 = vadd.f32 %v3945_v41, %v4973_v51  ;;  %v2853_v7 = vmax.f32 %v2830_v14, 0.0 }
 0x300   :  { %v2856_v37 = vmax.f32 %v2833_v18, 0.0 }
 0x301   :  { %v2854_v53 = vmax.f32 %v2831_v38, 0.0  ;;  %v3904_v9 = vpop.f32.mrb[12].mxu1  ;;  %2902 = vmatpush1.bf16.msra.mxu0 %v2871_v28  ;;  %v4187_v38 = vld [vmem:[%s5078_s5 + $0x8] sm:$0xff]  }
 0x302   :  { %v2873_v34 = vpack.c.bf16 %v2856_v37, %v2855_v49  ;;  %v3946_v39 = vadd.f32 %v3904_v9, %v4940_v31  ;;  %v2746_v55 = vpop.f32.mrb[13].mxu1  ;;  %2903 = vmatprep.subr.bf16.mxu0 %v4199_v15  ;;  %v4190_v49 = vld [vmem:[%s5078_s5 + $0x20] sm:$0xff]   ;;  %v4191_v37 = vld [vmem:[%s5078_s5 + $0x28] sm:$0xff]  }
 0x303   :  { %v2872_v4 = vpack.c.bf16 %v2854_v53, %v2853_v7  ;;  %v3947_v3 = vadd.f32 %v2746_v55, %v4942_v13  ;;  %v3905_v16 = vpop.f32.mrb[14].mxu1  ;;  %v4192_v7 = vld [vmem:[%s5078_s5 + $0x30] sm:$0xff]   ;;  %v4193_v53 = vld [vmem:[%s5078_s5 + $0x38] sm:$0xff]  }
 0x304   :  { %v2836_v47 = vadd.f32 %v3946_v39, %v4973_v51  ;;  %v3948_v43 = vadd.f32 %v3905_v16, %v4944_v24  ;;  %v2749_v8 = vpop.f32.mrb[15].mxu1  ;;  %v3285_v16 = vld [vmem:[%s5080_s6] ss:$0 sm:$0xff] }
 0x305   :  { %v2834_v11 = vadd.f32 %v3947_v3, %v4973_v51  ;;  %v3949_v23 = vadd.f32 %v2749_v8, %v4946_v2  ;;  %2904 = vmatpush1.bf16.msra.mxu0 %v2872_v4 }
 0x306   :  { %v2837_v45 = vadd.f32 %v3948_v43, %v4973_v51  ;;  %2905 = vmatprep.subr.bf16.mxu0 %v4199_v15  ;;  %v2859_v27 = vmax.f32 %v2836_v47, 0.0 }
 0x307   :  { %v2835_v31 = vadd.f32 %v3949_v23, %v4973_v51  ;;  %v2857_v13 = vmax.f32 %v2834_v11, 0.0 }
 0x308   :  { %v2860_v25 = vmax.f32 %v2837_v45, 0.0 }
 0x309   :  { %v2858_v44 = vmax.f32 %v2835_v31, 0.0  ;;  %v3908_v36 = vpop.f32.mrb[16].mxu1  ;;  %2906 = vmatpush1.bf16.msra.mxu0 %v2873_v34 }
 0x30a   :  { %v2875_v61 = vpack.c.bf16 %v2860_v25, %v2859_v27  ;;  %v3950_v24 = vadd.f32 %v3908_v36, %v4948_v35  ;;  %v2762_v20 = vpop.f32.mrb[17].mxu1  ;;  %2907 = vmatprep.subr.bf16.mxu0 %v4199_v15 }
 0x30b   :  { %v2874_v2 = vpack.c.bf16 %v2858_v44, %v2857_v13  ;;  %v3951_v30 = vadd.f32 %v2762_v20, %v4950_v19  ;;  %v3909_v40 = vpop.f32.mrb[18].mxu1 }
 0x30c   :  { %v2840_v50 = vadd.f32 %v3950_v24, %v4973_v51  ;;  %v3952_v42 = vadd.f32 %v3909_v40, %v4952_v6  ;;  %v2765_v12 = vpop.f32.mrb[19].mxu1 }
 0x30d   :  { %v2838_v32 = vadd.f32 %v3951_v30, %v4973_v51  ;;  %v3953_v54 = vadd.f32 %v2765_v12, %v4954_v62  ;;  %2908 = vmatpush1.bf16.msra.mxu0 %v2874_v2 }
 0x30e   :  { %v2841_v29 = vadd.f32 %v3952_v42, %v4973_v51  ;;  %2909 = vmatprep.subr.bf16.mxu0 %v4199_v15  ;;  %v2863_v59 = vmax.f32 %v2840_v50, 0.0 }
 0x30f   :  { %v2839_v35 = vadd.f32 %v3953_v54, %v4973_v51  ;;  %v2861_v19 = vmax.f32 %v2838_v32, 0.0 }
 0x310   :  { %v2864_v63 = vmax.f32 %v2841_v29, 0.0 }
 0x311   :  { %v2862_v17 = vmax.f32 %v2839_v35, 0.0  ;;  %v3912_v26 = vpop.f32.mrb[40].mxu1  ;;  %2910 = vmatpush1.bf16.msra.mxu0 %v2875_v61 }
 0x312   :  { %v2877_v57 = vpack.c.bf16 %v2864_v63, %v2863_v59  ;;  %v2814_v6 = vadd.f32 %v3912_v26, %v4964_v33  ;;  %v2778_v28 = vpop.f32.mrb[41].mxu1  ;;  %2911 = vmatprep.subr.bf16.mxu0 %v4199_v15 }
 0x313   :  { %v2876_v62 = vpack.c.bf16 %v2862_v17, %v2861_v19  ;;  %v2812_v60 = vadd.f32 %v2778_v28, %v4966_v21  ;;  %v3913_v5 = vpop.f32.mrb[42].mxu1 }
 0x314   :  { %v2844_v46 = vadd.f32 %v4973_v51, %v2814_v6  ;;  %v2781_v58 = vpop.f32.mrb[43].mxu1 }
 0x315   :  { %v2842_v22 = vadd.f32 %v4973_v51, %v2812_v60  ;;  %v2813_v52 = vadd.f32 %v2781_v58, %v4968_v48  ;;  %2912 = vmatpush1.bf16.msra.mxu0 %v2876_v62  ;;  %v3282_v48 = vcombine.low %v4960_v1, %v4960_v1  ;;  %v4189_v1 = vld [vmem:[%s5078_s5 + $0x18] sm:$0xff]  }
 0x316   :  { %2913 = vmatprep.subr.bf16.mxu0 %v4199_v15  ;;  %v2867_v33 = vmax.f32 %v2844_v46, 0.0 }
 0x317   :  { %v2843_v10 = vadd.f32 %v4973_v51, %v2813_v52  ;;  %v2865_v56 = vmax.f32 %v2842_v22, 0.0  ;;  %v4186_v51 = vld [vmem:[%s5078_s5] sm:$0xff]  }
 0x318   :  { %v2879_v41 = vpack.c.bf16 %v2867_v33, %v2867_v33 }
 0x319   :  { %v2866_v14 = vmax.f32 %v2843_v10, 0.0  ;;  %2914 = vmatpush1.bf16.msra.mxu0 %v2877_v57 }
 0x31a   :  { %2915 = vmatprep.subr.bf16.mxu0 %v4199_v15  ;;  %v2893_v18 = vsel %vm2891_vm11, %v2879_v41, 0 }
 0x31b   :  { %v2878_v21 = vpack.c.bf16 %v2866_v14, %v2865_v56 }
 0x31d   :  { %2916 = vmatpush1.bf16.msra.mxu0 %v2878_v21 }
 0x31e   :  { %2917 = vmatprep.subr.bf16.mxu0 %v4199_v15  ;;  %v4188_v15 = vld [vmem:[%s5078_s5 + $0x10] sm:$0xff]  }
 0x321   :  { %2918 = vmatpush1.bf16.msra.mxu0 %v2893_v18 }
 0x322   :  { %3914 = vmatprep.subr.bf16.mxu0 %v4197_v0 }
 0x324   :  { %2928 = vmatmul.mubr.bf16.vlgmr.msra.gmra.mrb[84].mxu0 %v3282_v48 }
 0x325   :  { %3915 = vmatpush3.bf16.msra.mxu0 %v4186_v51  ;;  %3930 = vmatprep.mubr.msk.bf16.mxu0 %vm4198_vm0, %v4197_v0 }
 0x326   :  { %3916 = vmatprep.subr.bf16.mxu0 %v4197_v0 }
 0x329   :  { %3917 = vmatpush3.bf16.msra.mxu0 %v4187_v38 }
 0x32a   :  { %3918 = vmatprep.subr.bf16.mxu0 %v4197_v0 }
 0x32d   :  { %3919 = vmatpush3.bf16.msra.mxu0 %v4188_v15 }
 0x32e   :  { %3920 = vmatprep.subr.bf16.mxu0 %v4197_v0 }
 0x331   :  { %3921 = vmatpush3.bf16.msra.mxu0 %v4189_v1 }
 0x332   :  { %3922 = vmatprep.subr.bf16.mxu0 %v4197_v0 }
 0x335   :  { %3923 = vmatpush3.bf16.msra.mxu0 %v4190_v49 }
 0x336   :  { %3924 = vmatprep.subr.bf16.mxu0 %v4197_v0 }
 0x339   :  { %3925 = vmatpush3.bf16.msra.mxu0 %v4191_v37 }
 0x33a   :  { %3926 = vmatprep.subr.bf16.mxu0 %v4197_v0 }
 0x33d   :  { %3927 = vmatpush3.bf16.msra.mxu0 %v4192_v7 }
 0x33e   :  { %3928 = vmatprep.subr.bf16.mxu0 %v4197_v0 }
 0x341   :  { %3929 = vmatpush3.bf16.msra.mxu0 %v4193_v53 }
 0x3f7   :  { %v2929_v9 = vpop.f32.mrb[84].mxu0 }
 0x3f8   :  { %v2935_v34 = vmul.f32 0.0625, %v2929_v9  ;;  %v2931_v39 = vpop.f32.mrb[85].mxu0 }
 0x3f9   :  { %v2932_v55 = vpop.f32.mrb[86].mxu0 }
 0x3fa   :  { %v2936_v4 = vpack.c.bf16 %v2935_v34, %v2935_v34  ;;  %v2933_v3 = vpop.f32.mrb[87].mxu0 }
 0x3fc   :  { %3931 = vmatmul.mubr.bf16.vlgmr.msra.gmra.mrb[88].mxu0 %v2936_v4 }
 0x4cf   :  { %v3042_v47 = vpop.f32.mrb[88].mxu0 }
 0x4d0   :  { %v3043_v43 = vadd.f32 %v3285_v16, %v3042_v47  ;;  %v3932_v8 = vpop.f32.mrb[89].mxu0 }
 0x4d1   :  { %v3045_v0 = vpop.f32.mrb[90].mxu0 }
 0x4d2   :  { %3048 = vst [vmem:[%s5081_s7] sm:$0x3] %v3043_v43  ;;  %v3933_v11 = vpop.f32.mrb[91].mxu0 }

</bundles_post_ra>
